<compile_context>
chip_gen: v6e
topology: v6e:2x2x1
jax: 0.10.0
libtpu: 0.0.40
codegen_flags: <defaults>
</compile_context>

<pallas_src>
import jax
import jax.numpy as jnp
from jax.experimental import pallas as pl
from jax.experimental.pallas import tpu as pltpu

_PAD = 8                                  # border rows around padded buffers (sublane aligned)
_VMEM_LIMIT = 64 * 1024 * 1024            # raise the 16/32 MiB scoped default
_DEFAULT_BUDGET = 40 * 1024 * 1024        # per-step scratch+temporary budget used to pick block_b


# ---------------------------------------------------------------------------
# Kernel: BB samples per grid step, whole forward pass.
# ---------------------------------------------------------------------------
def _speech_kernel(x_ref, w1_ref, b1_ref, w2_ref, b2_ref, w3_ref, b3_ref,
                   wfc_ref, bfc_ref, out_ref, s1, p1, s2, p2, s3):
    BB = x_ref.shape[0]
    T = x_ref.shape[1] - 2 * _PAD
    T2, T4, T8 = T // 2, T // 4, T // 8
    P = _PAD
    f32 = jnp.float32

    def conv_bn_relu(src, w_ref, b_ref, L):
        # Conv1d(k=3, pad=1) + folded BN + ReLU as 3 accumulated MXU matmuls,
        # one per tap, contracting Cin (no lane-axis im2col concat, no
        # (BB, L, 3*Cin) temporary).  The k-shift is a sublane-offset ref load;
        # the zero rows either side of the interior provide the conv zero pad.
        # Leading-dim reshapes leave the lane dim untouched (layout preserving
        # when L % 8 == 0).  Accumulation / bias / ReLU stay f32.
        cin = src.shape[-1]
        y = jnp.dot(src[:, pl.ds(P - 1, L), :].reshape(BB * L, cin), w_ref[0],
                    preferred_element_type=f32)
        y = y + jnp.dot(src[:, pl.ds(P, L), :].reshape(BB * L, cin), w_ref[1],
                        preferred_element_type=f32)
        y = y + jnp.dot(src[:, pl.ds(P + 1, L), :].reshape(BB * L, cin), w_ref[2],
                        preferred_element_type=f32)
        y = jnp.maximum(y + b_ref[...], 0.0)
        return y.reshape(BB, L, -1)                            # (BB, L, Cout) f32

    def maxpool2_into(dst, src, l_out):
        # MaxPool1d(2) materialized ONCE: two stride-2 sublane loads + one f32
        # max, cast to the activation dtype only at the store that feeds the
        # next conv's matmuls.  The zero borders (conv zero padding of the
        # pooled activation) are re-written every step: scratch persists across
        # steps, but with a "parallel" grid axis the second TensorCore never
        # executes program_id == 0, so a first-step-only init would leave its
        # copy of the scratch uninitialized.
        cout = dst.shape[-1]
        z = jnp.zeros((BB, P, cout), dst.dtype)
        dst[:, 0:P, :] = z
        dst[:, P + l_out:P + l_out + P, :] = z
        pooled = jnp.maximum(src[:, pl.ds(0, l_out, stride=2), :],
                             src[:, pl.ds(1, l_out, stride=2), :])
        dst[:, P:P + l_out, :] = pooled.astype(dst.dtype)

    # ---- conv1 + BN + ReLU: taps read straight from the pre-padded NTC block
    s1[...] = conv_bn_relu(x_ref, w1_ref, b1_ref, T)           # (BB, T,   32) f32
    maxpool2_into(p1, s1, T2)                                  # pooled1 (act dtype)

    # ---- conv2 + BN + ReLU on pooled1
    s2[...] = conv_bn_relu(p1, w2_ref, b2_ref, T2)             # (BB, T/2, 64) f32
    maxpool2_into(p2, s2, T4)                                  # pooled2 (act dtype)

    # ---- conv3 + BN + ReLU on pooled2
    s3[...] = conv_bn_relu(p2, w3_ref, b3_ref, T4)             # (BB, T/4, 128) f32

    # ---- pool3 + AdaptiveAvgPool1d(1): max over pairs, then a plain SUM over
    # time (the 1/(T//8) mean factor is folded into wfc in the wrapper).
    pooled3 = jnp.maximum(s3[:, pl.ds(0, T8, stride=2), :],
                          s3[:, pl.ds(1, T8, stride=2), :])    # (BB, T/8, 128) f32
    feat = jnp.sum(pooled3, axis=1)                            # (BB, 128) f32

    # ---- Linear(128 -> 2): one (BB,128)@(128,2) matmul per grid step
    out_ref[0, :, :] = jnp.dot(feat, wfc_ref[...],
                               preferred_element_type=f32) + bfc_ref[...]


# ---------------------------------------------------------------------------
# Wrapper: VMEM-budgeted block_b, layout plumbing, weight folding.
# ---------------------------------------------------------------------------
def _per_sample_vmem_bytes(T, C, act_bytes):
    """Rough per-sample VMEM footprint (scratch + double-buffered input + f32 temps)."""
    T2, T4 = T // 2, T // 4
    pad = 2 * _PAD
    s_scratch = (T * 32 + T2 * 64 + T4 * 128) * 4                    # conv outputs (f32)
    p_scratch = ((T2 + pad) * 32 + (T4 + pad) * 64) * act_bytes      # pooled buffers
    inputs = 2 * (T + pad) * C * act_bytes                           # double-buffered input block
    temps = 2 * T * 32 * 4 + (T + pad) * C * act_bytes               # live f32 accumulators + a tap
    return s_scratch + p_scratch + inputs + temps


def _pick_block_b(B, T, C, act_bytes, budget_bytes, block_b):
    if block_b is None:
        per = _per_sample_vmem_bytes(T, C, act_bytes)
        block_b = max(8, min(128, budget_bytes // max(per, 1)))
    bb_cap = int(max(1, min(block_b, B)))
    nblk = pl.cdiv(B, bb_cap)
    if B >= 2:
        nblk = max(nblk, 2)          # keep both TensorCores busy on dual-TC chips
    if nblk > 1 and nblk % 2 == 1:
        nblk += 1                    # even #steps => balanced 2-TC split (v7x)
    bb = pl.cdiv(B, nblk)
    return bb, nblk


def speech_commands_forward(x_nct, params, *, block_b=None,
                            act_dtype=jnp.bfloat16,
                            vmem_budget_bytes=_DEFAULT_BUDGET):
    """x_nct: (B, n_mels, T) float32, T a positive multiple of 8. Returns (B, 2)."""
    w1, b1, w2, b2, w3, b3, wfc, bfc = params
    B, C, T = x_nct.shape
    assert T % 8 == 0 and T >= 8, "T must be a positive multiple of 8 (three MaxPool(2) stages)"

    act_bytes = jnp.dtype(act_dtype).itemsize
    bb, nblk = _pick_block_b(B, T, C, act_bytes, vmem_budget_bytes, block_b)
    Bp = nblk * bb

    # Layout plumbing in XLA (fused transpose + pad + cast): NCT -> NTC, zero-pad
    # the time axis by _PAD rows on each side (provides conv1's zero padding),
    # cast to the activation dtype.  This removes the in-kernel XLU transpose and
    # the 40-lane masked padded input store.
    x = jnp.transpose(x_nct, (0, 2, 1)).astype(act_dtype)
    x = jnp.pad(x, ((0, Bp - B), (_PAD, _PAD), (0, 0)))

    # Weights: per-tap (3, Cin, Cout) slices, pre-cast for the MXU's native path.
    w1c = w1.astype(act_dtype)
    w2c = w2.astype(act_dtype)
    w3c = w3.astype(act_dtype)
    # Fold the AdaptiveAvgPool1d(1) mean (1 / (T//8)) into the FC weight so the
    # kernel only does a plain sum over time.
    wfc_s = (wfc / float(T // 8)).astype(jnp.float32)

    def full_spec(a):
        nd = a.ndim
        return pl.BlockSpec(a.shape, lambda i, _nd=nd: (0,) * _nd)

    T2, T4 = T // 2, T // 4
    out = pl.pallas_call(
        _speech_kernel,
        out_shape=jax.ShapeDtypeStruct((nblk, bb, 2), jnp.float32),
        grid_spec=pltpu.PrefetchScalarGridSpec(
            num_scalar_prefetch=0,
            grid=(nblk,),
            in_specs=[
                pl.BlockSpec((bb, T + 2 * _PAD, C), lambda i: (i, 0, 0)),
                full_spec(w1c), full_spec(b1),
                full_spec(w2c), full_spec(b2),
                full_spec(w3c), full_spec(b3),
                full_spec(wfc_s), full_spec(bfc),
            ],
            out_specs=pl.BlockSpec((1, bb, 2), lambda i: (i, 0, 0)),
            scratch_shapes=[
                pltpu.VMEM((bb, T, 32), jnp.float32),                # conv1 out (f32)
                pltpu.VMEM((bb, T2 + 2 * _PAD, 32), act_dtype),      # pooled1, zero-bordered
                pltpu.VMEM((bb, T2, 64), jnp.float32),               # conv2 out (f32)
                pltpu.VMEM((bb, T4 + 2 * _PAD, 64), act_dtype),      # pooled2, zero-bordered
                pltpu.VMEM((bb, T4, 128), jnp.float32),              # conv3 out (f32)
            ]),
        compiler_params=pltpu.CompilerParams(
            dimension_semantics=("parallel",),
            vmem_limit_bytes=_VMEM_LIMIT),
    )(x, w1c, b1, w2c, b2, w3c, b3, wfc_s, bfc)
    return out.reshape(Bp, 2)[:B]


# ---------------------------------------------------------------------------
# Deterministic parameter construction (conv + eval-mode BN folded together).
# Conv weights are stored as per-tap slices: (3, Cin, Cout), w[k] = W_torch[:,:,k].T.
# ---------------------------------------------------------------------------
def init_params(key, n_mels=40, eps=1e-5):
    def conv_bn(key, cin, cout):
        k1, k2, k3, k4, k5, k6 = jax.random.split(key, 6)
        w_torch = 0.1 * jax.random.normal(k1, (cout, cin, 3), jnp.float32)  # (Cout,Cin,K)
        b_conv = 0.05 * jax.random.normal(k2, (cout,), jnp.float32)
        gamma = 1.0 + 0.1 * jax.random.normal(k3, (cout,), jnp.float32)
        beta = 0.05 * jax.random.normal(k4, (cout,), jnp.float32)
        r_mean = 0.1 * jax.random.normal(k5, (cout,), jnp.float32)
        r_var = 1.0 + jnp.abs(jax.random.normal(k6, (cout,), jnp.float32))
        scale = gamma / jnp.sqrt(r_var + eps)                               # (Cout,)
        w = jnp.transpose(w_torch, (2, 1, 0)) * scale[None, None, :]        # (3, Cin, Cout)
        bias = ((b_conv - r_mean) * scale + beta)[None, :]                  # (1, Cout)
        return w, bias

    k1, k2, k3, k4 = jax.random.split(key, 4)
    w1, b1 = conv_bn(k1, n_mels, 32)
    w2, b2 = conv_bn(k2, 32, 64)
    w3, b3 = conv_bn(k3, 64, 128)
    kfw, kfb = jax.random.split(k4)
    wfc_torch = 0.1 * jax.random.normal(kfw, (2, 128), jnp.float32)         # torch (out,in)
    bfc_torch = 0.05 * jax.random.normal(kfb, (2,), jnp.float32)
    wfc = wfc_torch.T                                                       # (128, 2)
    bfc = bfc_torch[None, :]                                                # (1, 2)
    return (w1, b1, w2, b2, w3, b3, wfc, bfc)


# ---------------------------------------------------------------------------
# Pure-JAX reference (same math, no Pallas) for a sanity check
# ---------------------------------------------------------------------------
def reference_forward(x_nct, params):
    w1, b1, w2, b2, w3, b3, wfc, bfc = params

    def conv_bn_relu(h_tc, w, b):
        L = h_tc.shape[0]
        hp = jnp.pad(h_tc, ((1, 1), (0, 0)))
        y = hp[0:L] @ w[0] + hp[1:L + 1] @ w[1] + hp[2:L + 2] @ w[2] + b
        return jnp.maximum(y, 0.0)

    def pool(h):
        L, cc = h.shape
        return jnp.max(h.reshape(L // 2, 2, cc), axis=1)

    outs = []
    for i in range(x_nct.shape[0]):
        h = x_nct[i].T
        h = pool(conv_bn_relu(h, w1, b1))
        h = pool(conv_bn_relu(h, w2, b2))
        h = pool(conv_bn_relu(h, w3, b3))
        feat = jnp.mean(h, axis=0, keepdims=True)
        outs.append(feat @ wfc + bfc)
    return jnp.concatenate(outs, axis=0)


if __name__ == "__main__":
    B, n_mels, T = 8, 40, 32
    key = jax.random.PRNGKey(0)
    k_x, k_p = jax.random.split(key)

    x = jax.random.normal(k_x, (B, n_mels, T), jnp.float32)   # NCT, like PyTorch
    params = init_params(k_p, n_mels=n_mels)

    fwd = jax.jit(speech_commands_forward,
                  static_argnames=("block_b", "act_dtype", "vmem_budget_bytes"))

    ref = jax.block_until_ready(reference_forward(x, params))

    # f32 activation path: tight check against the pure-JAX reference.
    out_f32 = jax.block_until_ready(fwd(x, params, act_dtype=jnp.float32))
    assert out_f32.shape == (B, 2), out_f32.shape
    assert jnp.allclose(out_f32, ref, atol=5e-4, rtol=5e-4), (out_f32, ref)

    # bf16 activation path (default fast path): looser tolerance.
    out_bf16 = jax.block_until_ready(fwd(x, params))
    assert out_bf16.shape == (B, 2), out_bf16.shape
    assert jnp.allclose(out_bf16, ref, atol=2.5e-1, rtol=5e-2), (out_bf16, ref)

    print("KERNEL_OK")
</pallas_src>

<mosaic_0001>
module attributes {stable_mosaic.version = 11 : i64} {
  func.func @_speech_kernel(%arg0: i32, %arg1: memref<4x48x40xf32, #tpu.memory_space<vmem>>, %arg2: memref<3x40x32xf32, #tpu.memory_space<vmem>>, %arg3: memref<1x32xf32, #tpu.memory_space<vmem>>, %arg4: memref<3x32x64xf32, #tpu.memory_space<vmem>>, %arg5: memref<1x64xf32, #tpu.memory_space<vmem>>, %arg6: memref<3x64x128xf32, #tpu.memory_space<vmem>>, %arg7: memref<1x128xf32, #tpu.memory_space<vmem>>, %arg8: memref<128x2xf32, #tpu.memory_space<vmem>>, %arg9: memref<1x2xf32, #tpu.memory_space<vmem>>, %arg10: memref<1x4x2xf32, #tpu.memory_space<vmem>>, %arg11: memref<4x32x32xf32, #tpu.memory_space<vmem>>, %arg12: memref<4x32x32xf32, #tpu.memory_space<vmem>>, %arg13: memref<4x16x64xf32, #tpu.memory_space<vmem>>, %arg14: memref<4x24x64xf32, #tpu.memory_space<vmem>>, %arg15: memref<4x8x128xf32, #tpu.memory_space<vmem>>) attributes {dimension_semantics = [#tpu.dimension_semantics<parallel>], iteration_bounds = array<i64: 2>, scalar_prefetch = 0 : i64, scratch_operands = 5 : i64, tpu.core_type = #tpu.core_type<tc>, window_params = [{transform_indices = @transform_0, window_bounds = array<i64: 4, 48, 40>}, {pipeline_mode = #tpu.pipeline_mode<synchronous>, transform_indices = @transform_1, window_bounds = array<i64: 3, 40, 32>}, {pipeline_mode = #tpu.pipeline_mode<synchronous>, transform_indices = @transform_2, window_bounds = array<i64: 1, 32>}, {pipeline_mode = #tpu.pipeline_mode<synchronous>, transform_indices = @transform_3, window_bounds = array<i64: 3, 32, 64>}, {pipeline_mode = #tpu.pipeline_mode<synchronous>, transform_indices = @transform_4, window_bounds = array<i64: 1, 64>}, {pipeline_mode = #tpu.pipeline_mode<synchronous>, transform_indices = @transform_5, window_bounds = array<i64: 3, 64, 128>}, {pipeline_mode = #tpu.pipeline_mode<synchronous>, transform_indices = @transform_6, window_bounds = array<i64: 1, 128>}, {pipeline_mode = #tpu.pipeline_mode<synchronous>, transform_indices = @transform_7, window_bounds = array<i64: 128, 2>}, {pipeline_mode = #tpu.pipeline_mode<synchronous>, transform_indices = @transform_8, window_bounds = array<i64: 1, 2>}, {transform_indices = @transform_9, window_bounds = array<i64: 1, 4, 2>}]} {
    %c0 = arith.constant 0 : index
    %c7 = arith.constant 7 : index
    %c0_0 = arith.constant 0 : index
    %0 = vector.load %arg1[%c0, %c7, %c0_0] : memref<4x48x40xf32, #tpu.memory_space<vmem>>, vector<4x32x40xf32>
    %1 = vector.shape_cast %0 : vector<4x32x40xf32> to vector<128x40xf32>
    %c0_1 = arith.constant 0 : index
    %c0_2 = arith.constant 0 : index
    %c0_3 = arith.constant 0 : index
    %2 = vector.load %arg2[%c0_1, %c0_2, %c0_3] : memref<3x40x32xf32, #tpu.memory_space<vmem>>, vector<1x40x32xf32>
    %3 = vector.shape_cast %2 : vector<1x40x32xf32> to vector<40x32xf32>
    %cst = arith.constant dense<0.000000e+00> : vector<128x32xf32>
    %4 = tpu.matmul %1, %3, %cst {dimension_numbers = #tpu.dot_dimension_numbers<[1], [0], [0], [1], [0, 0, 1, 1], [], []>} : vector<128x40xf32>, vector<40x32xf32>, vector<128x32xf32> -> vector<128x32xf32>
    %c0_4 = arith.constant 0 : index
    %c8 = arith.constant 8 : index
    %c0_5 = arith.constant 0 : index
    %5 = vector.load %arg1[%c0_4, %c8, %c0_5] : memref<4x48x40xf32, #tpu.memory_space<vmem>>, vector<4x32x40xf32>
    %6 = vector.shape_cast %5 : vector<4x32x40xf32> to vector<128x40xf32>
    %c1 = arith.constant 1 : index
    %c0_6 = arith.constant 0 : index
    %c0_7 = arith.constant 0 : index
    %7 = vector.load %arg2[%c1, %c0_6, %c0_7] : memref<3x40x32xf32, #tpu.memory_space<vmem>>, vector<1x40x32xf32>
    %8 = vector.shape_cast %7 : vector<1x40x32xf32> to vector<40x32xf32>
    %cst_8 = arith.constant dense<0.000000e+00> : vector<128x32xf32>
    %9 = tpu.matmul %6, %8, %cst_8 {dimension_numbers = #tpu.dot_dimension_numbers<[1], [0], [0], [1], [0, 0, 1, 1], [], []>} : vector<128x40xf32>, vector<40x32xf32>, vector<128x32xf32> -> vector<128x32xf32>
    %10 = arith.addf %4, %9 : vector<128x32xf32>
    %c0_9 = arith.constant 0 : index
    %c9 = arith.constant 9 : index
    %c0_10 = arith.constant 0 : index
    %11 = vector.load %arg1[%c0_9, %c9, %c0_10] : memref<4x48x40xf32, #tpu.memory_space<vmem>>, vector<4x32x40xf32>
    %12 = vector.shape_cast %11 : vector<4x32x40xf32> to vector<128x40xf32>
    %c2 = arith.constant 2 : index
    %c0_11 = arith.constant 0 : index
    %c0_12 = arith.constant 0 : index
    %13 = vector.load %arg2[%c2, %c0_11, %c0_12] : memref<3x40x32xf32, #tpu.memory_space<vmem>>, vector<1x40x32xf32>
    %14 = vector.shape_cast %13 : vector<1x40x32xf32> to vector<40x32xf32>
    %cst_13 = arith.constant dense<0.000000e+00> : vector<128x32xf32>
    %15 = tpu.matmul %12, %14, %cst_13 {dimension_numbers = #tpu.dot_dimension_numbers<[1], [0], [0], [1], [0, 0, 1, 1], [], []>} : vector<128x40xf32>, vector<40x32xf32>, vector<128x32xf32> -> vector<128x32xf32>
    %16 = arith.addf %10, %15 : vector<128x32xf32>
    %c0_14 = arith.constant 0 : index
    %c0_15 = arith.constant 0 : index
    %17 = vector.load %arg3[%c0_14, %c0_15] : memref<1x32xf32, #tpu.memory_space<vmem>>, vector<1x32xf32>
    %18 = vector.broadcast %17 : vector<1x32xf32> to vector<128x32xf32>
    %19 = arith.addf %16, %18 : vector<128x32xf32>
    %cst_16 = arith.constant 0.000000e+00 : f32
    %20 = vector.broadcast %cst_16 : f32 to vector<128x32xf32>
    %21 = arith.maximumf %19, %20 : vector<128x32xf32>
    %22 = vector.shape_cast %21 : vector<128x32xf32> to vector<4x32x32xf32>
    %c0_17 = arith.constant 0 : index
    %c0_18 = arith.constant 0 : index
    %c0_19 = arith.constant 0 : index
    %23 = vector.load %arg11[%c0_17, %c0_18, %c0_19] : memref<4x32x32xf32, #tpu.memory_space<vmem>>, vector<4x32x32xf32>
    tpu.vector_store %arg11[%c0_17, %c0_18, %c0_19], %22 {strides = array<i32>} : memref<4x32x32xf32, #tpu.memory_space<vmem>>, vector<4x32x32xf32>,
    %cst_20 = arith.constant 0.000000e+00 : f32
    %24 = vector.broadcast %cst_20 : f32 to vector<4x8x32xf32>
    %c0_21 = arith.constant 0 : index
    %c0_22 = arith.constant 0 : index
    %c0_23 = arith.constant 0 : index
    %25 = vector.load %arg12[%c0_21, %c0_22, %c0_23] : memref<4x32x32xf32, #tpu.memory_space<vmem>>, vector<4x8x32xf32>
    tpu.vector_store %arg12[%c0_21, %c0_22, %c0_23], %24 {strides = array<i32>} : memref<4x32x32xf32, #tpu.memory_space<vmem>>, vector<4x8x32xf32>,
    %c0_24 = arith.constant 0 : index
    %c24 = arith.constant 24 : index
    %c0_25 = arith.constant 0 : index
    %26 = vector.load %arg12[%c0_24, %c24, %c0_25] : memref<4x32x32xf32, #tpu.memory_space<vmem>>, vector<4x8x32xf32>
    tpu.vector_store %arg12[%c0_24, %c24, %c0_25], %24 {strides = array<i32>} : memref<4x32x32xf32, #tpu.memory_space<vmem>>, vector<4x8x32xf32>,
    %c0_26 = arith.constant 0 : index
    %c0_27 = arith.constant 0 : index
    %c0_28 = arith.constant 0 : index
    %27 = tpu.strided_load %arg11[%c0_26, %c0_27, %c0_28] {strides = array<i32: 1, 2, 1>} : memref<4x32x32xf32, #tpu.memory_space<vmem>>, vector<4x16x32xf32>
    %c0_29 = arith.constant 0 : index
    %c1_30 = arith.constant 1 : index
    %c0_31 = arith.constant 0 : index
    %28 = tpu.strided_load %arg11[%c0_29, %c1_30, %c0_31] {strides = array<i32: 1, 2, 1>} : memref<4x32x32xf32, #tpu.memory_space<vmem>>, vector<4x16x32xf32>
    %29 = arith.maximumf %27, %28 : vector<4x16x32xf32>
    %c0_32 = arith.constant 0 : index
    %c8_33 = arith.constant 8 : index
    %c0_34 = arith.constant 0 : index
    %30 = vector.load %arg12[%c0_32, %c8_33, %c0_34] : memref<4x32x32xf32, #tpu.memory_space<vmem>>, vector<4x16x32xf32>
    tpu.vector_store %arg12[%c0_32, %c8_33, %c0_34], %29 {strides = array<i32>} : memref<4x32x32xf32, #tpu.memory_space<vmem>>, vector<4x16x32xf32>,
    %c0_35 = arith.constant 0 : index
    %c7_36 = arith.constant 7 : index
    %c0_37 = arith.constant 0 : index
    %31 = vector.load %arg12[%c0_35, %c7_36, %c0_37] : memref<4x32x32xf32, #tpu.memory_space<vmem>>, vector<4x16x32xf32>
    %32 = vector.shape_cast %31 : vector<4x16x32xf32> to vector<64x32xf32>
    %c0_38 = arith.constant 0 : index
    %c0_39 = arith.constant 0 : index
    %c0_40 = arith.constant 0 : index
    %33 = vector.load %arg4[%c0_38, %c0_39, %c0_40] : memref<3x32x64xf32, #tpu.memory_space<vmem>>, vector<1x32x64xf32>
    %34 = vector.shape_cast %33 : vector<1x32x64xf32> to vector<32x64xf32>
    %cst_41 = arith.constant dense<0.000000e+00> : vector<64x64xf32>
    %35 = tpu.matmul %32, %34, %cst_41 {dimension_numbers = #tpu.dot_dimension_numbers<[1], [0], [0], [1], [0, 0, 1, 1], [], []>} : vector<64x32xf32>, vector<32x64xf32>, vector<64x64xf32> -> vector<64x64xf32>
    %c0_42 = arith.constant 0 : index
    %c8_43 = arith.constant 8 : index
    %c0_44 = arith.constant 0 : index
    %36 = vector.load %arg12[%c0_42, %c8_43, %c0_44] : memref<4x32x32xf32, #tpu.memory_space<vmem>>, vector<4x16x32xf32>
    %37 = vector.shape_cast %36 : vector<4x16x32xf32> to vector<64x32xf32>
    %c1_45 = arith.constant 1 : index
    %c0_46 = arith.constant 0 : index
    %c0_47 = arith.constant 0 : index
    %38 = vector.load %arg4[%c1_45, %c0_46, %c0_47] : memref<3x32x64xf32, #tpu.memory_space<vmem>>, vector<1x32x64xf32>
    %39 = vector.shape_cast %38 : vector<1x32x64xf32> to vector<32x64xf32>
    %cst_48 = arith.constant dense<0.000000e+00> : vector<64x64xf32>
    %40 = tpu.matmul %37, %39, %cst_48 {dimension_numbers = #tpu.dot_dimension_numbers<[1], [0], [0], [1], [0, 0, 1, 1], [], []>} : vector<64x32xf32>, vector<32x64xf32>, vector<64x64xf32> -> vector<64x64xf32>
    %41 = arith.addf %35, %40 : vector<64x64xf32>
    %c0_49 = arith.constant 0 : index
    %c9_50 = arith.constant 9 : index
    %c0_51 = arith.constant 0 : index
    %42 = vector.load %arg12[%c0_49, %c9_50, %c0_51] : memref<4x32x32xf32, #tpu.memory_space<vmem>>, vector<4x16x32xf32>
    %43 = vector.shape_cast %42 : vector<4x16x32xf32> to vector<64x32xf32>
    %c2_52 = arith.constant 2 : index
    %c0_53 = arith.constant 0 : index
    %c0_54 = arith.constant 0 : index
    %44 = vector.load %arg4[%c2_52, %c0_53, %c0_54] : memref<3x32x64xf32, #tpu.memory_space<vmem>>, vector<1x32x64xf32>
    %45 = vector.shape_cast %44 : vector<1x32x64xf32> to vector<32x64xf32>
    %cst_55 = arith.constant dense<0.000000e+00> : vector<64x64xf32>
    %46 = tpu.matmul %43, %45, %cst_55 {dimension_numbers = #tpu.dot_dimension_numbers<[1], [0], [0], [1], [0, 0, 1, 1], [], []>} : vector<64x32xf32>, vector<32x64xf32>, vector<64x64xf32> -> vector<64x64xf32>
    %47 = arith.addf %41, %46 : vector<64x64xf32>
    %c0_56 = arith.constant 0 : index
    %c0_57 = arith.constant 0 : index
    %48 = vector.load %arg5[%c0_56, %c0_57] : memref<1x64xf32, #tpu.memory_space<vmem>>, vector<1x64xf32>
    %49 = vector.broadcast %48 : vector<1x64xf32> to vector<64x64xf32>
    %50 = arith.addf %47, %49 : vector<64x64xf32>
    %cst_58 = arith.constant 0.000000e+00 : f32
    %51 = vector.broadcast %cst_58 : f32 to vector<64x64xf32>
    %52 = arith.maximumf %50, %51 : vector<64x64xf32>
    %53 = vector.shape_cast %52 : vector<64x64xf32> to vector<4x16x64xf32>
    %c0_59 = arith.constant 0 : index
    %c0_60 = arith.constant 0 : index
    %c0_61 = arith.constant 0 : index
    %54 = vector.load %arg13[%c0_59, %c0_60, %c0_61] : memref<4x16x64xf32, #tpu.memory_space<vmem>>, vector<4x16x64xf32>
    tpu.vector_store %arg13[%c0_59, %c0_60, %c0_61], %53 {strides = array<i32>} : memref<4x16x64xf32, #tpu.memory_space<vmem>>, vector<4x16x64xf32>,
    %cst_62 = arith.constant 0.000000e+00 : f32
    %55 = vector.broadcast %cst_62 : f32 to vector<4x8x64xf32>
    %c0_63 = arith.constant 0 : index
    %c0_64 = arith.constant 0 : index
    %c0_65 = arith.constant 0 : index
    %56 = vector.load %arg14[%c0_63, %c0_64, %c0_65] : memref<4x24x64xf32, #tpu.memory_space<vmem>>, vector<4x8x64xf32>
    tpu.vector_store %arg14[%c0_63, %c0_64, %c0_65], %55 {strides = array<i32>} : memref<4x24x64xf32, #tpu.memory_space<vmem>>, vector<4x8x64xf32>,
    %c0_66 = arith.constant 0 : index
    %c16 = arith.constant 16 : index
    %c0_67 = arith.constant 0 : index
    %57 = vector.load %arg14[%c0_66, %c16, %c0_67] : memref<4x24x64xf32, #tpu.memory_space<vmem>>, vector<4x8x64xf32>
    tpu.vector_store %arg14[%c0_66, %c16, %c0_67], %55 {strides = array<i32>} : memref<4x24x64xf32, #tpu.memory_space<vmem>>, vector<4x8x64xf32>,
    %c0_68 = arith.constant 0 : index
    %c0_69 = arith.constant 0 : index
    %c0_70 = arith.constant 0 : index
    %58 = tpu.strided_load %arg13[%c0_68, %c0_69, %c0_70] {strides = array<i32: 1, 2, 1>} : memref<4x16x64xf32, #tpu.memory_space<vmem>>, vector<4x8x64xf32>
    %c0_71 = arith.constant 0 : index
    %c1_72 = arith.constant 1 : index
    %c0_73 = arith.constant 0 : index
    %59 = tpu.strided_load %arg13[%c0_71, %c1_72, %c0_73] {strides = array<i32: 1, 2, 1>} : memref<4x16x64xf32, #tpu.memory_space<vmem>>, vector<4x8x64xf32>
    %60 = arith.maximumf %58, %59 : vector<4x8x64xf32>
    %c0_74 = arith.constant 0 : index
    %c8_75 = arith.constant 8 : index
    %c0_76 = arith.constant 0 : index
    %61 = vector.load %arg14[%c0_74, %c8_75, %c0_76] : memref<4x24x64xf32, #tpu.memory_space<vmem>>, vector<4x8x64xf32>
    tpu.vector_store %arg14[%c0_74, %c8_75, %c0_76], %60 {strides = array<i32>} : memref<4x24x64xf32, #tpu.memory_space<vmem>>, vector<4x8x64xf32>,
    %c0_77 = arith.constant 0 : index
    %c7_78 = arith.constant 7 : index
    %c0_79 = arith.constant 0 : index
    %62 = vector.load %arg14[%c0_77, %c7_78, %c0_79] : memref<4x24x64xf32, #tpu.memory_space<vmem>>, vector<4x8x64xf32>
    %63 = vector.shape_cast %62 : vector<4x8x64xf32> to vector<32x64xf32>
    %c0_80 = arith.constant 0 : index
    %c0_81 = arith.constant 0 : index
    %c0_82 = arith.constant 0 : index
    %64 = vector.load %arg6[%c0_80, %c0_81, %c0_82] : memref<3x64x128xf32, #tpu.memory_space<vmem>>, vector<1x64x128xf32>
    %65 = vector.shape_cast %64 : vector<1x64x128xf32> to vector<64x128xf32>
    %cst_83 = arith.constant dense<0.000000e+00> : vector<32x128xf32>
    %66 = tpu.matmul %63, %65, %cst_83 {dimension_numbers = #tpu.dot_dimension_numbers<[1], [0], [0], [1], [0, 0, 1, 1], [], []>} : vector<32x64xf32>, vector<64x128xf32>, vector<32x128xf32> -> vector<32x128xf32>
    %c0_84 = arith.constant 0 : index
    %c8_85 = arith.constant 8 : index
    %c0_86 = arith.constant 0 : index
    %67 = vector.load %arg14[%c0_84, %c8_85, %c0_86] : memref<4x24x64xf32, #tpu.memory_space<vmem>>, vector<4x8x64xf32>
    %68 = vector.shape_cast %67 : vector<4x8x64xf32> to vector<32x64xf32>
    %c1_87 = arith.constant 1 : index
    %c0_88 = arith.constant 0 : index
    %c0_89 = arith.constant 0 : index
    %69 = vector.load %arg6[%c1_87, %c0_88, %c0_89] : memref<3x64x128xf32, #tpu.memory_space<vmem>>, vector<1x64x128xf32>
    %70 = vector.shape_cast %69 : vector<1x64x128xf32> to vector<64x128xf32>
    %cst_90 = arith.constant dense<0.000000e+00> : vector<32x128xf32>
    %71 = tpu.matmul %68, %70, %cst_90 {dimension_numbers = #tpu.dot_dimension_numbers<[1], [0], [0], [1], [0, 0, 1, 1], [], []>} : vector<32x64xf32>, vector<64x128xf32>, vector<32x128xf32> -> vector<32x128xf32>
    %72 = arith.addf %66, %71 : vector<32x128xf32>
    %c0_91 = arith.constant 0 : index
    %c9_92 = arith.constant 9 : index
    %c0_93 = arith.constant 0 : index
    %73 = vector.load %arg14[%c0_91, %c9_92, %c0_93] : memref<4x24x64xf32, #tpu.memory_space<vmem>>, vector<4x8x64xf32>
    %74 = vector.shape_cast %73 : vector<4x8x64xf32> to vector<32x64xf32>
    %c2_94 = arith.constant 2 : index
    %c0_95 = arith.constant 0 : index
    %c0_96 = arith.constant 0 : index
    %75 = vector.load %arg6[%c2_94, %c0_95, %c0_96] : memref<3x64x128xf32, #tpu.memory_space<vmem>>, vector<1x64x128xf32>
    %76 = vector.shape_cast %75 : vector<1x64x128xf32> to vector<64x128xf32>
    %cst_97 = arith.constant dense<0.000000e+00> : vector<32x128xf32>
    %77 = tpu.matmul %74, %76, %cst_97 {dimension_numbers = #tpu.dot_dimension_numbers<[1], [0], [0], [1], [0, 0, 1, 1], [], []>} : vector<32x64xf32>, vector<64x128xf32>, vector<32x128xf32> -> vector<32x128xf32>
    %78 = arith.addf %72, %77 : vector<32x128xf32>
    %c0_98 = arith.constant 0 : index
    %c0_99 = arith.constant 0 : index
    %79 = vector.load %arg7[%c0_98, %c0_99] : memref<1x128xf32, #tpu.memory_space<vmem>>, vector<1x128xf32>
    %80 = vector.broadcast %79 : vector<1x128xf32> to vector<32x128xf32>
    %81 = arith.addf %78, %80 : vector<32x128xf32>
    %cst_100 = arith.constant 0.000000e+00 : f32
    %82 = vector.broadcast %cst_100 : f32 to vector<32x128xf32>
    %83 = arith.maximumf %81, %82 : vector<32x128xf32>
    %84 = vector.shape_cast %83 : vector<32x128xf32> to vector<4x8x128xf32>
    %c0_101 = arith.constant 0 : index
    %c0_102 = arith.constant 0 : index
    %c0_103 = arith.constant 0 : index
    %85 = vector.load %arg15[%c0_101, %c0_102, %c0_103] : memref<4x8x128xf32, #tpu.memory_space<vmem>>, vector<4x8x128xf32>
    tpu.vector_store %arg15[%c0_101, %c0_102, %c0_103], %84 {strides = array<i32>} : memref<4x8x128xf32, #tpu.memory_space<vmem>>, vector<4x8x128xf32>,
    %c0_104 = arith.constant 0 : index
    %c0_105 = arith.constant 0 : index
    %c0_106 = arith.constant 0 : index
    %86 = tpu.strided_load %arg15[%c0_104, %c0_105, %c0_106] {strides = array<i32: 1, 2, 1>} : memref<4x8x128xf32, #tpu.memory_space<vmem>>, vector<4x4x128xf32>
    %c0_107 = arith.constant 0 : index
    %c1_108 = arith.constant 1 : index
    %c0_109 = arith.constant 0 : index
    %87 = tpu.strided_load %arg15[%c0_107, %c1_108, %c0_109] {strides = array<i32: 1, 2, 1>} : memref<4x8x128xf32, #tpu.memory_space<vmem>>, vector<4x4x128xf32>
    %88 = arith.maximumf %86, %87 : vector<4x4x128xf32>
    %cst_110 = arith.constant dense<0.000000e+00> : vector<4x128xf32>
    %89 = vector.multi_reduction <add>, %88, %cst_110 [1] : vector<4x4x128xf32> to vector<4x128xf32>
    %c0_111 = arith.constant 0 : index
    %c0_112 = arith.constant 0 : index
    %90 = vector.load %arg8[%c0_111, %c0_112] : memref<128x2xf32, #tpu.memory_space<vmem>>, vector<128x2xf32>
    %cst_113 = arith.constant dense<0.000000e+00> : vector<4x2xf32>
    %91 = tpu.matmul %89, %90, %cst_113 {dimension_numbers = #tpu.dot_dimension_numbers<[1], [0], [0], [1], [0, 0, 1, 1], [], []>} : vector<4x128xf32>, vector<128x2xf32>, vector<4x2xf32> -> vector<4x2xf32>
    %c0_114 = arith.constant 0 : index
    %c0_115 = arith.constant 0 : index
    %92 = vector.load %arg9[%c0_114, %c0_115] : memref<1x2xf32, #tpu.memory_space<vmem>>, vector<1x2xf32>
    %93 = vector.broadcast %92 : vector<1x2xf32> to vector<4x2xf32>
    %94 = arith.addf %91, %93 : vector<4x2xf32>
    %c0_116 = arith.constant 0 : index
    %c0_117 = arith.constant 0 : index
    %c0_118 = arith.constant 0 : index
    %95 = vector.load %arg10[%c0_116, %c0_117, %c0_118] : memref<1x4x2xf32, #tpu.memory_space<vmem>>, vector<1x4x2xf32>
    %96 = vector.shape_cast %95 : vector<1x4x2xf32> to vector<4x2xf32>
    %97 = vector.shape_cast %94 : vector<4x2xf32> to vector<1x4x2xf32>
    tpu.vector_store %arg10[%c0_116, %c0_117, %c0_118], %97 {strides = array<i32>} : memref<1x4x2xf32, #tpu.memory_space<vmem>>, vector<1x4x2xf32>,
    return
  }
  func.func @transform_0(%arg0: i32) -> (i32, i32, i32) {
    %c0_i32 = arith.constant 0 : i32
    %c0_i32_0 = arith.constant 0 : i32
    %c0_i32_1 = arith.constant 0 : i32
    return %arg0, %c0_i32, %c0_i32_0 : i32, i32, i32
  }
  func.func @transform_1(%arg0: i32) -> (i32, i32, i32) {
    %c0_i32 = arith.constant 0 : i32
    %c0_i32_0 = arith.constant 0 : i32
    %c0_i32_1 = arith.constant 0 : i32
    %c0_i32_2 = arith.constant 0 : i32
    return %c0_i32, %c0_i32_0, %c0_i32_1 : i32, i32, i32
  }
  func.func @transform_2(%arg0: i32) -> (i32, i32) {
    %c0_i32 = arith.constant 0 : i32
    %c0_i32_0 = arith.constant 0 : i32
    %c0_i32_1 = arith.constant 0 : i32
    return %c0_i32, %c0_i32_0 : i32, i32
  }
  func.func @transform_3(%arg0: i32) -> (i32, i32, i32) {
    %c0_i32 = arith.constant 0 : i32
    %c0_i32_0 = arith.constant 0 : i32
    %c0_i32_1 = arith.constant 0 : i32
    %c0_i32_2 = arith.constant 0 : i32
    return %c0_i32, %c0_i32_0, %c0_i32_1 : i32, i32, i32
  }
  func.func @transform_4(%arg0: i32) -> (i32, i32) {
    %c0_i32 = arith.constant 0 : i32
    %c0_i32_0 = arith.constant 0 : i32
    %c0_i32_1 = arith.constant 0 : i32
    return %c0_i32, %c0_i32_0 : i32, i32
  }
  func.func @transform_5(%arg0: i32) -> (i32, i32, i32) {
    %c0_i32 = arith.constant 0 : i32
    %c0_i32_0 = arith.constant 0 : i32
    %c0_i32_1 = arith.constant 0 : i32
    %c0_i32_2 = arith.constant 0 : i32
    return %c0_i32, %c0_i32_0, %c0_i32_1 : i32, i32, i32
  }
  func.func @transform_6(%arg0: i32) -> (i32, i32) {
    %c0_i32 = arith.constant 0 : i32
    %c0_i32_0 = arith.constant 0 : i32
    %c0_i32_1 = arith.constant 0 : i32
    return %c0_i32, %c0_i32_0 : i32, i32
  }
  func.func @transform_7(%arg0: i32) -> (i32, i32) {
    %c0_i32 = arith.constant 0 : i32
    %c0_i32_0 = arith.constant 0 : i32
    %c0_i32_1 = arith.constant 0 : i32
    return %c0_i32, %c0_i32_0 : i32, i32
  }
  func.func @transform_8(%arg0: i32) -> (i32, i32) {
    %c0_i32 = arith.constant 0 : i32
    %c0_i32_0 = arith.constant 0 : i32
    %c0_i32_1 = arith.constant 0 : i32
    return %c0_i32, %c0_i32_0 : i32, i32
  }
  func.func @transform_9(%arg0: i32) -> (i32, i32, i32) {
    %c0_i32 = arith.constant 0 : i32
    %c0_i32_0 = arith.constant 0 : i32
    %c0_i32_1 = arith.constant 0 : i32
    return %arg0, %c0_i32, %c0_i32_0 : i32, i32, i32
  }
}

</mosaic_0001>

<bundles_post_ra>
// kernel: speech_commands_forward.1
= control target key start
LH: loop header
LB: loop body
LE: loop exit
PB: predicated region body
PF: predicated region fallthrough
CT: control target
= control target key end

     0   :  { %s2791_s30 = smov 0   ;;  %s3293_s0 = inlined_call_operand.vmem [shape: f32[8,48,40], index: 0, kind: input, shape index: {}]   ;;  %s3294_s1 = inlined_call_operand.vmem [shape: f32[3,40,32], index: 1, kind: input, shape index: {}]   ;;  %s3295_s2 = inlined_call_operand.vmem [shape: f32[1,32], index: 2, kind: input, shape index: {}]   ;;  %s3296_s3 = inlined_call_operand.vmem [shape: f32[3,32,64], index: 3, kind: input, shape index: {}]   ;;  %s3297_s4 = inlined_call_operand.vmem [shape: f32[1,64], index: 4, kind: input, shape index: {}]   ;;  %s3298_s5 = inlined_call_operand.vmem [shape: f32[3,64,128], index: 5, kind: input, shape index: {}]   ;;  %s3299_s6 = inlined_call_operand.vmem [shape: f32[1,128], index: 6, kind: input, shape index: {}]   ;;  %s3300_s7 = inlined_call_operand.vmem [shape: f32[128,2], index: 7, kind: input, shape index: {}]   ;;  %s3301_s8 = inlined_call_operand.vmem [shape: f32[1,2], index: 8, kind: input, shape index: {}]   ;;  %s3302_s9 = inlined_call_operand.vmem [shape: f32[2,4,2], index: 9, kind: output, shape index: {}]  }
   0x1 LB: > { %s2797_s10 = sadd.s32 4294967295, %s2737_s30   ;;  %p2167_p0 = scmp.ge.s32.totalorder %s2737_s30, 1  ;;  %s2737_s30 = sphi %s2791_s30, %s19_s30  }
   0x2   : > { %p289_p1 = scmp.lt.s32.totalorder %s2737_s30, 3 }
   0x4   : > { %p290_p2 = pnand %p2167_p0, %p289_p1 }
   0x5   : > { %s2168_s15 = sshll.u32 (!%p290_p2), %s2797_s10, 2  ;;  %p332_p4 = scmp.lt.s32.totalorder (!%p290_p2), %s2797_s10, 1 }
   0x6   : > { %293 = sbr.rel (%p290_p2) target bundleno = 963 (0x3c3), region = 56  ;;  %p326_p3 = scmp.lt.s32.totalorder (!%p290_p2), %s2168_s15, 7 }
   0xb   : > { %v2175_v0 = vld [vmem:[%s3294_s1 + $0x48] sm:$0xff]  ;;  %v2174_v1 = vld [vmem:[%s3294_s1 + $0x40] sm:$0xff]  ;;  %v2173_v2 = vld [vmem:[%s3294_s1 + $0x38] sm:$0xff]  ;;  %s3304_s15 = smov (!%p326_p3, %s2168_s15), 7  ;;  %vm379_vm0 = vcmask 326656   ;;  %vm1036_vm1 = vcmask 261120  }
   0xc   : > { %2447 = vmatprep.subr.mxu0 %v2175_v0  ;;  %2710 = vmatprep.subr.mxu1 %v2175_v0  ;;  %v2172_v3 = vld [vmem:[%s3294_s1 + $0x30] sm:$0xff]  ;;  %s2720_s20 = smul.u32 48, %s3304_s15  ;;  %v2171_v4 = vld [vmem:[%s3294_s1 + $0x28] sm:$0xff]  ;;  %v356_v10 = vld [vmem:[%s3294_s1 + $0x20] sm:$0xff]  ;;  %v2739_v63 = vmov 0.0   ;;  %vm1564_vm2 = vcmask 523264  }
   0xd   : > { %2448 = vmatpush3.msra.mxu0 %v2175_v0  ;;  %2715 = vmatpush3.msra.mxu1 %v2175_v0  ;;  %v2212_v9 = vld [vmem:[%s3294_s1 + $0x70] sm:$0xff]  ;;  %v355_v15 = vld [vmem:[%s3294_s1 + $0x18] sm:$0xff]  ;;  %v2211_v16 = vld [vmem:[%s3294_s1 + $0x68] sm:$0xff]  ;;  %1057 = vst.msk [vmem:[#allocation3 + $0x18] sm:$0xff] %vm1036_vm1, %v2739_v63  ;;  %vm2740_vm3 = vmmov 0   ;;  %vm1975_vm4 = vcmask 1043456  }
   0xe   : > { %2449 = vmatprep.subr.mxu0 %v2174_v1  ;;  %2711 = vmatprep.subr.mxu1 %v2174_v1  ;;  %s2820_s25 = scalar_lea.vmem %s3293_s0, %s2720_s20  ;;  %v354_v17 = vld [vmem:[%s3294_s1 + $0x10] sm:$0xff]  ;;  %v353_v22 = vld [vmem:[%s3294_s1 + $0x8] sm:$0xff]  ;;  %v2210_v23 = vld [vmem:[%s3294_s1 + $0x60] sm:$0xff]  ;;  %1053 = vst.msk [vmem:[#allocation3] sm:$0xff] %vm1036_vm1, %v2739_v63  ;;  %vm2031_vm5 = vcmask 1041409   ;;  %vm2033_vm6 = vcmask 1042434  }
   0xf   : > { %2450 = vmatpush3.msra.mxu0 %v2174_v1  ;;  %2716 = vmatpush3.msra.mxu1 %v2174_v1  ;;  %v357_v5 = vld [vmem:[%s2820_s25 + $0x8] sm:$0xff]  ;;  %v367_v6 = vld [vmem:[%s2820_s25 + $0x78] sm:$0xff]  ;;  %v358_v7 = vld [vmem:[%s2820_s25 + $0x10] sm:$0xff]  ;;  %1054 = vst.msk [vmem:[#allocation3 + $0x20] sm:$0xff] %vm1036_vm1, %v2739_v63  ;;  %vm2035_vm7 = vcmask 1043459   ;;  %s3306_s10 = smov (!%p332_p4, %s2797_s10), 1 }
  0x10   : > { %2451 = vmatprep.subr.mxu0 %v2173_v2  ;;  %2712 = vmatprep.subr.mxu1 %v2173_v2  ;;  %v368_v8 = vld [vmem:[%s2820_s25 + $0x80] sm:$0xff]  ;;  %v359_v11 = vld [vmem:[%s2820_s25 + $0x18] sm:$0xff]  ;;  %v371_v19 = vld [vmem:[%s2820_s25 + $0xa8] sm:$0xff]  ;;  %1055 = vst.msk [vmem:[#allocation3 + $0x40] sm:$0xff] %vm1036_vm1, %v2739_v63  ;;  %s2170_s23 = sshll.u32 %s3306_s10, 2  ;;  %vm2108_vm8 = vcmask 11264  }
  0x11   : > { %2452 = vmatpush3.msra.mxu0 %v2173_v2  ;;  %2717 = vmatpush3.msra.mxu1 %v2173_v2  ;;  %v369_v12 = vld [vmem:[%s2820_s25 + $0x98] sm:$0xff]  ;;  %v360_v13 = vld [vmem:[%s2820_s25 + $0x20] sm:$0xff]  ;;  %v372_v21 = vld [vmem:[%s2820_s25 + $0xb0] sm:$0xff]  ;;  %1056 = vst.msk [vmem:[#allocation3 + $0x60] sm:$0xff] %vm1036_vm1, %v2739_v63  ;;  %s335_s28 = scalar_lea.vmem %s3302_s9, %s2170_s23 }
  0x12   : > { %2453 = vmatprep.subr.mxu0 %v2172_v3  ;;  %2713 = vmatprep.subr.mxu1 %v2172_v3  ;;  %v370_v14 = vld [vmem:[%s2820_s25 + $0xa0] sm:$0xff]  ;;  %v361_v18 = vld [vmem:[%s2820_s25 + $0x38] sm:$0xff]  ;;  %v363_v25 = vld [vmem:[%s2820_s25 + $0x48] sm:$0xff]  ;;  %1058 = vst.msk [vmem:[#allocation3 + $0x38] sm:$0xff] %vm1036_vm1, %v2739_v63 }
  0x13   : > { %2454 = vmatpush3.msra.mxu0 %v2172_v3  ;;  %2718 = vmatpush3.msra.mxu1 %v2172_v3  ;;  %v362_v20 = vld [vmem:[%s2820_s25 + $0x40] sm:$0xff]  ;;  %v364_v27 = vld [vmem:[%s2820_s25 + $0x50] sm:$0xff]  ;;  %v2209_v29 = vld [vmem:[%s3294_s1 + $0x58] sm:$0xff]  ;;  %1059 = vst.msk [vmem:[#allocation3 + $0x58] sm:$0xff] %vm1036_vm1, %v2739_v63 }
  0x14   : > { %2455 = vmatprep.subr.mxu0 %v2171_v4  ;;  %2714 = vmatprep.subr.mxu1 %v2171_v4  ;;  %v352_v24 = vld [vmem:[%s3294_s1] sm:$0xff]  ;;  %v337_v28 = vld [vmem:[%s2820_s25 + $0xf] sm:$0xff]  ;;  %v338_v31 = vld [vmem:[%s2820_s25 + $0x17] sm:$0xff]  ;;  %1060 = vst.msk [vmem:[#allocation3 + $0x78] sm:$0xff] %vm1036_vm1, %v2739_v63 }
  0x15   : > { %2456 = vmatpush3.msra.mxu0 %v2171_v4  ;;  %2719 = vmatpush3.msra.mxu1 %v2171_v4  ;;  %v336_v26 = vld [vmem:[%s2820_s25 + $0x7] sm:$0xff]  ;;  %v2208_v32 = vld [vmem:[%s3294_s1 + $0x50] sm:$0xff]  ;;  %v339_v34 = vld [vmem:[%s2820_s25 + $0x1f] sm:$0xff]  ;;  %1573 = vst.msk [vmem:[#allocation5] sm:$0xff] %vm1564_vm2, %v2739_v63 }
  0x16   : > { %2457 = vmatprep.mubr.msk.f32.mxu0 %vm379_vm0, %v357_v5  ;;  %2472 = vmatprep.mubr.msk.f32.mxu1 %vm379_vm0, %v367_v6  ;;  %v365_v30 = vld [vmem:[%s2820_s25 + $0x68] sm:$0xff]  ;;  %v366_v33 = vld [vmem:[%s2820_s25 + $0x70] sm:$0xff]  ;;  %v341_v37 = vld [vmem:[%s2820_s25 + $0x3f] sm:$0xff]  ;;  %1574 = vst.msk [vmem:[#allocation5 + $0x18] sm:$0xff] %vm1564_vm2, %v2739_v63 }
  0x17   : > { %2458 = vmatmul.mubr.msk.f32.vlgmr.msra.gmra.mxu0 %vm379_vm0, %v358_v7  ;;  %2473 = vmatmul.mubr.msk.f32.vlgmr.msra.gmra.mxu1 %vm379_vm0, %v368_v8  ;;  %v340_v35 = vld [vmem:[%s2820_s25 + $0x37] sm:$0xff]  ;;  %v766_v36 = vld [vmem:[%s2820_s25 + $0x9] sm:$0xff]  ;;  %v769_v42 = vld [vmem:[%s2820_s25 + $0x21] sm:$0xff]  ;;  %1575 = vst.msk [vmem:[#allocation5 + $0x30] sm:$0xff] %vm1564_vm2, %v2739_v63 }
  0x18   : > { %2515 = vmatprep.subr.mxu0 %v2212_v9  ;;  %2481 = vmatprep.subr.mxu1 %v356_v10  ;;  %v767_v38 = vld [vmem:[%s2820_s25 + $0x11] sm:$0xff]  ;;  %v342_v39 = vld [vmem:[%s2820_s25 + $0x47] sm:$0xff]  ;;  %v768_v40 = vld [vmem:[%s2820_s25 + $0x19] sm:$0xff]  ;;  %1576 = vst.msk [vmem:[#allocation5 + $0x48] sm:$0xff] %vm1564_vm2, %v2739_v63 }
  0x19   : > { %2516 = vmatpush3.msra.mxu0 %v2212_v9  ;;  %2460 = vmatprep.mubr.msk.f32.mxu0 %vm379_vm0, %v359_v11  ;;  %v343_v41 = vld [vmem:[%s2820_s25 + $0x4f] sm:$0xff]  ;;  %v344_v43 = vld [vmem:[%s2820_s25 + $0x67] sm:$0xff]  ;;  %v770_v44 = vld [vmem:[%s2820_s25 + $0x39] sm:$0xff]  ;;  %1577 = vst.msk [vmem:[#allocation5 + $0x10] sm:$0xff] %vm1564_vm2, %v2739_v63 }
  0x1a   : > { %2475 = vmatprep.mubr.msk.f32.mxu1 %vm379_vm0, %v369_v12  ;;  %2482 = vmatpush3.msra.mxu1 %v356_v10  ;;  %v345_v45 = vld [vmem:[%s2820_s25 + $0x6f] sm:$0xff]  ;;  %v771_v46 = vld [vmem:[%s2820_s25 + $0x41] sm:$0xff]  ;;  %v346_v47 = vld [vmem:[%s2820_s25 + $0x77] sm:$0xff]  ;;  %1578 = vst.msk [vmem:[#allocation5 + $0x28] sm:$0xff] %vm1564_vm2, %v2739_v63 }
  0x1b   : > { %2461 = vmatmul.mubr.msk.f32.gmra.mxu0 %vm379_vm0, %v360_v13  ;;  %2476 = vmatmul.mubr.msk.f32.gmra.mxu1 %vm379_vm0, %v370_v14  ;;  %v772_v48 = vld [vmem:[%s2820_s25 + $0x49] sm:$0xff]  ;;  %v347_v49 = vld [vmem:[%s2820_s25 + $0x7f] sm:$0xff]  ;;  %v773_v50 = vld [vmem:[%s2820_s25 + $0x51] sm:$0xff]  ;;  %1579 = vst.msk [vmem:[#allocation5 + $0x40] sm:$0xff] %vm1564_vm2, %v2739_v63 }
  0x1c   : > { %2483 = vmatprep.subr.mxu1 %v355_v15  ;;  %2517 = vmatprep.subr.mxu0 %v2211_v16  ;;  %v348_v51 = vld [vmem:[%s2820_s25 + $0x97] sm:$0xff]  ;;  %v774_v52 = vld [vmem:[%s2820_s25 + $0x69] sm:$0xff]  ;;  %v349_v53 = vld [vmem:[%s2820_s25 + $0x9f] sm:$0xff]  ;;  %1580 = vst.msk [vmem:[#allocation5 + $0x58] sm:$0xff] %vm1564_vm2, %v2739_v63 }
  0x1d   : > { %2484 = vmatpush3.msra.mxu1 %v355_v15  ;;  %2518 = vmatpush3.msra.mxu0 %v2211_v16  ;;  %v775_v54 = vld [vmem:[%s2820_s25 + $0x71] sm:$0xff]  ;;  %v350_v55 = vld [vmem:[%s2820_s25 + $0xa7] sm:$0xff]  ;;  %v776_v56 = vld [vmem:[%s2820_s25 + $0x79] sm:$0xff] }
  0x1e   : > { %2485 = vmatprep.subr.mxu1 %v354_v17  ;;  %2463 = vmatprep.mubr.msk.f32.mxu0 %vm379_vm0, %v361_v18  ;;  %v351_v57 = vld [vmem:[%s2820_s25 + $0xaf] sm:$0xff]  ;;  %v777_v58 = vld [vmem:[%s2820_s25 + $0x81] sm:$0xff]  ;;  %v778_v59 = vld [vmem:[%s2820_s25 + $0x99] sm:$0xff] }
  0x1f   : > { %2478 = vmatprep.mubr.msk.f32.mxu1 %vm379_vm0, %v371_v19  ;;  %2486 = vmatpush3.msra.mxu1 %v354_v17  ;;  %v779_v60 = vld [vmem:[%s2820_s25 + $0xa1] sm:$0xff]  ;;  %v780_v61 = vld [vmem:[%s2820_s25 + $0xa9] sm:$0xff]  ;;  %v781_v62 = vld [vmem:[%s2820_s25 + $0xb1] sm:$0xff] }
  0x20   : > { %2464 = vmatmul.mubr.msk.f32.gmra.mxu0 %vm379_vm0, %v362_v20  ;;  %2479 = vmatmul.mubr.msk.f32.gmra.mxu1 %vm379_vm0, %v372_v21  ;;  %v2233_v0 = vld [vmem:[%s3296_s3 + $0x38] sm:$0xff]  ;;  %v2232_v1 = vld [vmem:[%s3296_s3 + $0x30] sm:$0xff]  ;;  %v2231_v4 = vld [vmem:[%s3296_s3 + $0x28] sm:$0xff] }
  0x21   : > { %2487 = vmatprep.subr.mxu1 %v353_v22  ;;  %2519 = vmatprep.subr.mxu0 %v2210_v23  ;;  %v2253_v2 = vld [vmem:[%s3296_s3 + $0x58] sm:$0xff]  ;;  %v2252_v3 = vld [vmem:[%s3296_s3 + $0x50] sm:$0xff]  ;;  %v2251_v5 = vld [vmem:[%s3296_s3 + $0x48] sm:$0xff] }
  0x22   : > { %2488 = vmatpush3.msra.mxu1 %v353_v22  ;;  %2520 = vmatpush3.msra.mxu0 %v2210_v23  ;;  %v2230_v6 = vld [vmem:[%s3296_s3 + $0x20] sm:$0xff]  ;;  %v2991_v8 = vld [vmem:[%s3296_s3 + $0x18] sm:$0xff] }
  0x23   : > { %2489 = vmatprep.subr.mxu1 %v352_v24  ;;  %2466 = vmatprep.mubr.msk.f32.mxu0 %vm379_vm0, %v363_v25  ;;  %v2250_v7 = vld [vmem:[%s3296_s3 + $0x40] sm:$0xff] }
  0x24   : > { %2490 = vmatpush3.msra.mxu1 %v352_v24  ;;  %2491 = vmatprep.mubr.msk.f32.mxu1 %vm379_vm0, %v336_v26 }
  0x25   : > { %2467 = vmatmul.mubr.msk.f32.gmra.mxu0 %vm379_vm0, %v364_v27  ;;  %2492 = vmatmul.mubr.msk.f32.vlgmr.msra.gmra.mxu1 %vm379_vm0, %v337_v28 }
  0x26   : > { %2521 = vmatprep.subr.mxu0 %v2209_v29  ;;  %2469 = vmatprep.mubr.msk.f32.mxu0 %vm379_vm0, %v365_v30 }
  0x27   : > { %2522 = vmatpush3.msra.mxu0 %v2209_v29  ;;  %2494 = vmatprep.mubr.msk.f32.mxu1 %vm379_vm0, %v338_v31 }
  0x28   : > { %2523 = vmatprep.subr.mxu0 %v2208_v32  ;;  %2549 = vmatprep.subr.mxu1 %v2233_v0 }
  0x29   : > { %2470 = vmatmul.mubr.msk.f32.gmra.mxu0 %vm379_vm0, %v366_v33  ;;  %2495 = vmatmul.mubr.msk.f32.gmra.mxu1 %vm379_vm0, %v339_v34 }
  0x2a   : > { %2524 = vmatpush3.msra.mxu0 %v2208_v32  ;;  %2497 = vmatprep.mubr.msk.f32.mxu1 %vm379_vm0, %v340_v35  ;;  %v3009_v32 = vld [vmem:[%s3295_s2] ss:$0 sm:$0xff] }
  0x2b   : > { %2525 = vmatprep.mubr.msk.f32.mxu0 %vm379_vm0, %v766_v36  ;;  %2550 = vmatpush3.msra.mxu1 %v2233_v0 }
  0x2c   : > { %2551 = vmatprep.subr.mxu1 %v2232_v1  ;;  %2589 = vmatprep.subr.mxu0 %v2253_v2 }
  0x2d   : > { %2498 = vmatmul.mubr.msk.f32.gmra.mxu1 %vm379_vm0, %v341_v37  ;;  %2526 = vmatmul.mubr.msk.f32.vlgmr.msra.gmra.mxu0 %vm379_vm0, %v767_v38 }
  0x2e   : > { %2500 = vmatprep.mubr.msk.f32.mxu1 %vm379_vm0, %v342_v39  ;;  %2528 = vmatprep.mubr.msk.f32.mxu0 %vm379_vm0, %v768_v40 }
  0x2f   : > { %2552 = vmatpush3.msra.mxu1 %v2232_v1  ;;  %2590 = vmatpush3.msra.mxu0 %v2253_v2 }
  0x30   : > { %2591 = vmatprep.subr.mxu0 %v2252_v3  ;;  %2553 = vmatprep.subr.mxu1 %v2231_v4 }
  0x31   : > { %2501 = vmatmul.mubr.msk.f32.gmra.mxu1 %vm379_vm0, %v343_v41  ;;  %2529 = vmatmul.mubr.msk.f32.gmra.mxu0 %vm379_vm0, %v769_v42 }
  0x32   : > { %2503 = vmatprep.mubr.msk.f32.mxu1 %vm379_vm0, %v344_v43  ;;  %2531 = vmatprep.mubr.msk.f32.mxu0 %vm379_vm0, %v770_v44 }
  0x33   : > { %2592 = vmatpush3.msra.mxu0 %v2252_v3  ;;  %2554 = vmatpush3.msra.mxu1 %v2231_v4 }
  0x34   : > { %2593 = vmatprep.subr.mxu0 %v2251_v5  ;;  %2555 = vmatprep.subr.mxu1 %v2230_v6 }
  0x35   : > { %2504 = vmatmul.mubr.msk.f32.gmra.mxu1 %vm379_vm0, %v345_v45  ;;  %2532 = vmatmul.mubr.msk.f32.gmra.mxu0 %vm379_vm0, %v771_v46 }
  0x36   : > { %2506 = vmatprep.mubr.msk.f32.mxu1 %vm379_vm0, %v346_v47  ;;  %2534 = vmatprep.mubr.msk.f32.mxu0 %vm379_vm0, %v772_v48 }
  0x37   : > { %2594 = vmatpush3.msra.mxu0 %v2251_v5  ;;  %2556 = vmatpush3.msra.mxu1 %v2230_v6 }
  0x38   : > { %2595 = vmatprep.subr.mxu0 %v2250_v7  ;;  %2569 = vmatprep.subr.mxu1 %v2991_v8 }
  0x39   : > { %2507 = vmatmul.mubr.msk.f32.gmra.mxu1 %vm379_vm0, %v347_v49  ;;  %2535 = vmatmul.mubr.msk.f32.gmra.mxu0 %vm379_vm0, %v773_v50 }
  0x3a   : > { %2509 = vmatprep.mubr.msk.f32.mxu1 %vm379_vm0, %v348_v51  ;;  %2537 = vmatprep.mubr.msk.f32.mxu0 %vm379_vm0, %v774_v52 }
  0x3b   : > { %2596 = vmatpush3.msra.mxu0 %v2250_v7 }
  0x3d   : > { %2510 = vmatmul.mubr.msk.f32.gmra.mxu1 %vm379_vm0, %v349_v53  ;;  %2538 = vmatmul.mubr.msk.f32.gmra.mxu0 %vm379_vm0, %v775_v54 }
  0x3e   : > { %2512 = vmatprep.mubr.msk.f32.mxu1 %vm379_vm0, %v350_v55  ;;  %2540 = vmatprep.mubr.msk.f32.mxu0 %vm379_vm0, %v776_v56 }
  0x41   : > { %2513 = vmatmul.mubr.msk.f32.gmra.mxu1 %vm379_vm0, %v351_v57  ;;  %2541 = vmatmul.mubr.msk.f32.gmra.mxu0 %vm379_vm0, %v777_v58 }
  0x42   : > { %2543 = vmatprep.mubr.msk.f32.mxu0 %vm379_vm0, %v778_v59 }
  0x45   : > { %2544 = vmatmul.mubr.msk.f32.gmra.mxu0 %vm379_vm0, %v779_v60 }
  0x46   : > { %2546 = vmatprep.mubr.msk.f32.mxu0 %vm379_vm0, %v780_v61 }
  0x49   : > { %2547 = vmatmul.mubr.msk.f32.gmra.mxu0 %vm379_vm0, %v781_v62 }
  0xd7   : > { %v2459_v9 = vpop.f32.mrf.mxu0  ;;  %v2994_v10 = vpop.f32.mrf.mxu1 }
  0xd9   : > { %v494_v11 = vpop.f32.mrf.mxu0  ;;  %v2996_v12 = vpop.f32.mrf.mxu1 }
  0xdb   : > { %v2462_v13 = vpop.f32.mrf.mxu0  ;;  %v2998_v14 = vpop.f32.mrf.mxu1 }
  0xdd   : > { %v504_v15 = vpop.f32.mrf.mxu0  ;;  %v3000_v16 = vpop.f32.mrf.mxu1 }
  0xe0   : > { %v2465_v17 = vpop.f32.mrf.mxu0  ;;  %v3002_v18 = vpop.f32.mrf.mxu1 }
  0xe2   : > { %v514_v19 = vpop.f32.mrf.mxu0  ;;  %v3004_v20 = vpop.f32.mrf.mxu1 }
  0xe5   : > { %v2468_v21 = vpop.f32.mrf.mxu0  ;;  %v2493_v22 = vpop.f32.mrf.mxu1 }
  0xe6   : > { %v693_v29 = vadd.f32 %v2493_v22, %v2459_v9 }
  0xe7   : > { %v524_v23 = vpop.f32.mrf.mxu0  ;;  %v687_v24 = vpop.f32.mrf.mxu1 }
  0xe8   : > { %v688_v33 = vadd.f32 %v687_v24, %v494_v11 }
  0xe9   : > { %v2471_v25 = vpop.f32.mrf.mxu0  ;;  %v2496_v26 = vpop.f32.mrf.mxu1 }
  0xea   : > { %v703_v37 = vadd.f32 %v2496_v26, %v2462_v13 }
  0xeb   : > { %v534_v27 = vpop.f32.mrf.mxu0  ;;  %v697_v28 = vpop.f32.mrf.mxu1 }
  0xec   : > { %v698_v42 = vadd.f32 %v697_v28, %v504_v15 }
  0xed   : > { %v2499_v30 = vpop.f32.mrf.mxu1  ;;  %v2527_v31 = vpop.f32.mrf.mxu0 }
  0xee   : > { %v982_v34 = vadd.f32 %v2527_v31, %v693_v29  ;;  %v713_v48 = vadd.f32 %v2499_v30, %v2465_v17 }
  0xef   : > { %v707_v35 = vpop.f32.mrf.mxu1  ;;  %v902_v36 = vpop.f32.mrf.mxu0 }
  0xf0   : > { %v1005_v38 = vadd.f32 %v3009_v32, %v982_v34  ;;  %v981_v39 = vadd.f32 %v902_v36, %v688_v33  ;;  %v708_v54 = vadd.f32 %v707_v35, %v514_v19 }
  0xf1   : > { %v2502_v40 = vpop.f32.mrf.mxu1  ;;  %v2530_v41 = vpop.f32.mrf.mxu0 }
  0xf2   : > { %v1021_v43 = vmax.f32 %v1005_v38, 0.0  ;;  %v1004_v44 = vadd.f32 %v3009_v32, %v981_v39  ;;  %v984_v45 = vadd.f32 %v2530_v41, %v703_v37  ;;  %v723_v60 = vadd.f32 %v2502_v40, %v2468_v21 }
  0xf3   : > { %v717_v46 = vpop.f32.mrf.mxu1  ;;  %v912_v47 = vpop.f32.mrf.mxu0 }
  0xf4   : > { %1038 = vst.msk [vmem:[#allocation2 + $0x8] sm:$0xff] %vm1036_vm1, %v1021_v43  ;;  %v1020_v49 = vmax.f32 %v1004_v44, 0.0  ;;  %v1007_v50 = vadd.f32 %v3009_v32, %v984_v45  ;;  %v983_v51 = vadd.f32 %v912_v47, %v698_v42  ;;  %v718_v3 = vadd.f32 %v717_v46, %v524_v23 }
  0xf5   : > { %v2505_v52 = vpop.f32.mrf.mxu1  ;;  %v2533_v53 = vpop.f32.mrf.mxu0 }
  0xf6   : > { %1037 = vst.msk [vmem:[#allocation2] sm:$0xff] %vm1036_vm1, %v1020_v49  ;;  %v1023_v55 = vmax.f32 %v1007_v50, 0.0  ;;  %v1006_v56 = vadd.f32 %v3009_v32, %v983_v51  ;;  %v986_v57 = vadd.f32 %v2533_v53, %v713_v48  ;;  %v733_v11 = vadd.f32 %v2505_v52, %v2471_v25 }
  0xf7   : > { %v727_v58 = vpop.f32.mrf.mxu1  ;;  %v922_v59 = vpop.f32.mrf.mxu0 }
  0xf8   : > { %1040 = vst.msk [vmem:[#allocation2 + $0x18] sm:$0xff] %vm1036_vm1, %v1023_v55  ;;  %v1022_v61 = vmax.f32 %v1006_v56, 0.0  ;;  %v1009_v62 = vadd.f32 %v3009_v32, %v986_v57  ;;  %v985_v0 = vadd.f32 %v922_v59, %v708_v54  ;;  %v728_v23 = vadd.f32 %v727_v58, %v534_v27 }
  0xf9   : > { %v2508_v1 = vpop.f32.mrf.mxu1  ;;  %v2536_v2 = vpop.f32.mrf.mxu0 }
  0xfa   : > { %1039 = vst.msk [vmem:[#allocation2 + $0x10] sm:$0xff] %vm1036_vm1, %v1022_v61  ;;  %v1025_v4 = vmax.f32 %v1009_v62, 0.0  ;;  %v1008_v5 = vadd.f32 %v3009_v32, %v985_v0  ;;  %v988_v6 = vadd.f32 %v2536_v2, %v723_v60  ;;  %v743_v38 = vadd.f32 %v2508_v1, %v2994_v10 }
  0xfb   : > { %v737_v7 = vpop.f32.mrf.mxu1  ;;  %v932_v9 = vpop.f32.mrf.mxu0 }
  0xfc   : > { %1042 = vst.msk [vmem:[#allocation2 + $0x28] sm:$0xff] %vm1036_vm1, %v1025_v4  ;;  %v1024_v13 = vmax.f32 %v1008_v5, 0.0  ;;  %v1011_v15 = vadd.f32 %v3009_v32, %v988_v6  ;;  %v987_v17 = vadd.f32 %v932_v9, %v718_v3  ;;  %v738_v40 = vadd.f32 %v737_v7, %v2996_v12  ;;  %v1118_v5 = vld [vmem:[%s3296_s3 + $0x10] sm:$0xff] }
  0xfd   : > { %v1061_v19 = vld [vmem:[#allocation2] ss:$2 sm:$0xff]  ;;  %v1077_v21 = vld [vmem:[#allocation2 + $0x1] ss:$2 sm:$0xff]  ;;  %v2511_v22 = vpop.f32.mrf.mxu1  ;;  %v2539_v24 = vpop.f32.mrf.mxu0 }
  0xfe   : > { %1041 = vst.msk [vmem:[#allocation2 + $0x20] sm:$0xff] %vm1036_vm1, %v1024_v13  ;;  %v1027_v26 = vmax.f32 %v1011_v15, 0.0  ;;  %v1010_v28 = vadd.f32 %v3009_v32, %v987_v17  ;;  %v990_v29 = vadd.f32 %v2539_v24, %v733_v11  ;;  %v1092_v25 = vmax.f32 %v1061_v19, %v1077_v21  ;;  %v1117_v21 = vld [vmem:[%s3296_s3 + $0x8] sm:$0xff] }
  0xff   : > { %v747_v30 = vpop.f32.mrf.mxu1  ;;  %v942_v31 = vpop.f32.mrf.mxu0  ;;  %v753_v46 = vadd.f32 %v2511_v22, %v2998_v14 }
 0x100   : > { %1044 = vst.msk [vmem:[#allocation2 + $0x38] sm:$0xff] %vm1036_vm1, %v1027_v26  ;;  %v1026_v33 = vmax.f32 %v1010_v28, 0.0  ;;  %v1013_v34 = vadd.f32 %v3009_v32, %v990_v29  ;;  %v989_v35 = vadd.f32 %v942_v31, %v728_v23  ;;  %1100 = vst.msk [vmem:[#allocation3 + $0x8] sm:$0xff] %vm1036_vm1, %v1092_v25  ;;  %v748_v51 = vadd.f32 %v747_v30, %v3000_v16  ;;  %v1116_v28 = vld [vmem:[%s3296_s3] sm:$0xff] }
 0x101   : > { %v1063_v36 = vld [vmem:[#allocation2 + $0x10] ss:$2 sm:$0xff]  ;;  %v1079_v37 = vld [vmem:[#allocation2 + $0x11] ss:$2 sm:$0xff]  ;;  %v2542_v27 = vpop.f32.mrf.mxu0  ;;  %v2514_v43 = vpop.f32.mrf.mxu1 }
 0x102   : > { %v1093_v39 = vmax.f32 %v1063_v36, %v1079_v37  ;;  %1043 = vst.msk [vmem:[#allocation2 + $0x30] sm:$0xff] %vm1036_vm1, %v1026_v33  ;;  %v1029_v41 = vmax.f32 %v1013_v34, 0.0  ;;  %v1012_v42 = vadd.f32 %v3009_v32, %v989_v35  ;;  %v992_v44 = vadd.f32 %v2542_v27, %v743_v38 }
 0x103   : > { %v952_v45 = vpop.f32.mrf.mxu0  ;;  %v757_v52 = vpop.f32.mrf.mxu1  ;;  %v763_v57 = vadd.f32 %v2514_v43, %v3002_v18 }
 0x104   : > { %1101 = vst.msk [vmem:[#allocation3 + $0x10] sm:$0xff] %vm1036_vm1, %v1093_v39  ;;  %1046 = vst.msk [vmem:[#allocation2 + $0x48] sm:$0xff] %vm1036_vm1, %v1029_v41  ;;  %v1028_v10 = vmax.f32 %v1012_v42, 0.0  ;;  %v991_v47 = vadd.f32 %v952_v45, %v738_v40  ;;  %v1015_v12 = vadd.f32 %v3009_v32, %v992_v44  ;;  %v758_v0 = vadd.f32 %v757_v52, %v3004_v20 }
 0x105   : > { %v1065_v48 = vld [vmem:[#allocation2 + $0x20] ss:$2 sm:$0xff]  ;;  %v1081_v49 = vld [vmem:[#allocation2 + $0x21] ss:$2 sm:$0xff]  ;;  %v2545_v50 = vpop.f32.mrf.mxu0 }
 0x106   : > { %1045 = vst.msk [vmem:[#allocation2 + $0x40] sm:$0xff] %vm1036_vm1, %v1028_v10  ;;  %v1014_v53 = vadd.f32 %v3009_v32, %v991_v47  ;;  %v994_v54 = vadd.f32 %v2545_v50, %v753_v46  ;;  %v1094_v55 = vmax.f32 %v1065_v48, %v1081_v49  ;;  %v1031_v56 = vmax.f32 %v1015_v12, 0.0 }
 0x107   : > { %v962_v14 = vpop.f32.mrf.mxu0  ;;  %v1120_v61 = vld [vmem:[#allocation3 + $0x8] sm:$0xff] }
 0x108   : > { %v1030_v58 = vmax.f32 %v1014_v53, 0.0  ;;  %v1017_v59 = vadd.f32 %v3009_v32, %v994_v54  ;;  %v993_v60 = vadd.f32 %v962_v14, %v748_v51  ;;  %1102 = vst.msk [vmem:[#allocation3 + $0x28] sm:$0xff] %vm1036_vm1, %v1094_v55  ;;  %1048 = vst.msk [vmem:[#allocation2 + $0x58] sm:$0xff] %vm1036_vm1, %v1031_v56  ;;  %2557 = vmatprep.mubr.msk.f32.mxu1 %vm1036_vm1, %v1120_v61  ;;  %v1108_v10 = vld [vmem:[#allocation3 + $0x7] sm:$0xff]  ;;  %v2270_v53 = vld [vmem:[%s3298_s5 + $0x78] sm:$0xff] }
 0x109   : > { %v1067_v62 = vld [vmem:[#allocation2 + $0x30] ss:$2 sm:$0xff]  ;;  %v1083_v16 = vld [vmem:[#allocation2 + $0x31] ss:$2 sm:$0xff]  ;;  %v2548_v1 = vpop.f32.mrf.mxu0  ;;  %v2268_v14 = vld [vmem:[%s3298_s5 + $0x68] sm:$0xff] }
 0x10a   : > { %1047 = vst.msk [vmem:[#allocation2 + $0x50] sm:$0xff] %vm1036_vm1, %v1030_v58  ;;  %v1033_v2 = vmax.f32 %v1017_v59, 0.0  ;;  %v1016_v18 = vadd.f32 %v3009_v32, %v993_v60  ;;  %v996_v3 = vadd.f32 %v2548_v1, %v763_v57  ;;  %v1095_v4 = vmax.f32 %v1067_v62, %v1083_v16  ;;  %v1615_v54 = vld [vmem:[%s3298_s5 + $0x38] sm:$0xff]  ;;  %v2269_v55 = vld [vmem:[%s3298_s5 + $0x70] sm:$0xff]  ;;  %v1613_v57 = vld [vmem:[%s3298_s5 + $0x28] sm:$0xff] }
 0x10b   : > { %v972_v6 = vpop.f32.mrf.mxu0  ;;  %v1121_v7 = vld [vmem:[#allocation3 + $0x10] sm:$0xff]  ;;  %2631 = vmatprep.subr.mxu0 %v1615_v54  ;;  %v2267_v58 = vld [vmem:[%s3298_s5 + $0x60] sm:$0xff]  ;;  %v2266_v60 = vld [vmem:[%s3298_s5 + $0x58] sm:$0xff] }
 0x10c   : > { %v1391_v9 = vld [vmem:[#allocation3 + $0x9] sm:$0xff]  ;;  %v1392_v11 = vld [vmem:[#allocation3 + $0x11] sm:$0xff]  ;;  %1050 = vst.msk [vmem:[#allocation2 + $0x68] sm:$0xff] %vm1036_vm1, %v1033_v2  ;;  %v1032_v20 = vmax.f32 %v1016_v18, 0.0  ;;  %v1019_v13 = vadd.f32 %v3009_v32, %v996_v3  ;;  %v995_v15 = vadd.f32 %v972_v6, %v758_v0  ;;  %2558 = vmatmul.mubr.msk.f32.vlgmr.msra.gmra.mxu1 %vm1036_vm1, %v1121_v7  ;;  %1103 = vst.msk [vmem:[#allocation3 + $0x30] sm:$0xff] %vm1036_vm1, %v1095_v4 }
 0x10d   : > { %2597 = vmatprep.mubr.msk.f32.mxu0 %vm1036_vm1, %v1391_v9  ;;  %v1069_v17 = vld [vmem:[#allocation2 + $0x40] ss:$2 sm:$0xff]  ;;  %v1085_v19 = vld [vmem:[#allocation2 + $0x41] ss:$2 sm:$0xff]  ;;  %2570 = vmatpush3.msra.mxu1 %v2991_v8  ;;  %v1614_v56 = vld [vmem:[%s3298_s5 + $0x30] sm:$0xff] }
 0x10e   : > { %2598 = vmatmul.mubr.msk.f32.vlgmr.msra.gmra.mxu0 %vm1036_vm1, %v1392_v11  ;;  %1049 = vst.msk [vmem:[#allocation2 + $0x60] sm:$0xff] %vm1036_vm1, %v1032_v20  ;;  %v1035_v22 = vmax.f32 %v1019_v13, 0.0  ;;  %v1018_v24 = vadd.f32 %v3009_v32, %v995_v15  ;;  %v1096_v23 = vmax.f32 %v1069_v17, %v1085_v19  ;;  %2571 = vmatprep.subr.mxu1 %v1118_v5  ;;  %v1109_v47 = vld [vmem:[#allocation3 + $0xf] sm:$0xff]  ;;  %v1612_v59 = vld [vmem:[%s3298_s5 + $0x20] sm:$0xff]  ;;  %v1611_v61 = vld [vmem:[%s3298_s5 + $0x18] sm:$0xff] }
 0x10f   : > { %v1122_v26 = vld [vmem:[#allocation3 + $0x28] sm:$0xff]  ;;  %2572 = vmatpush3.msra.mxu1 %v1118_v5  ;;  %2632 = vmatpush3.msra.mxu0 %v1615_v54  ;;  %v2265_v62 = vld [vmem:[%s3298_s5 + $0x50] sm:$0xff]  ;;  %v2263_v2 = vld [vmem:[%s3298_s5 + $0x40] sm:$0xff] }
 0x110   : > { %1052 = vst.msk [vmem:[#allocation2 + $0x78] sm:$0xff] %vm1036_vm1, %v1035_v22  ;;  %v1034_v8 = vmax.f32 %v1018_v24, 0.0  ;;  %2560 = vmatprep.mubr.msk.f32.mxu1 %vm1036_vm1, %v1122_v26  ;;  %1104 = vst.msk [vmem:[#allocation3 + $0x48] sm:$0xff] %vm1036_vm1, %v1096_v23  ;;  %2573 = vmatprep.subr.mxu1 %v1117_v21  ;;  %v1110_v48 = vld [vmem:[#allocation3 + $0x27] sm:$0xff]  ;;  %v1610_v16 = vld [vmem:[%s3298_s5 + $0x10] sm:$0xff] }
 0x111   : > { %v1071_v29 = vld [vmem:[#allocation2 + $0x50] ss:$2 sm:$0xff]  ;;  %v1087_v30 = vld [vmem:[#allocation2 + $0x51] ss:$2 sm:$0xff]  ;;  %2574 = vmatpush3.msra.mxu1 %v1117_v21  ;;  %2633 = vmatprep.subr.mxu0 %v1614_v56  ;;  %v2264_v0 = vld [vmem:[%s3298_s5 + $0x48] sm:$0xff] }
 0x112   : > { %1051 = vst.msk [vmem:[#allocation2 + $0x70] sm:$0xff] %vm1036_vm1, %v1034_v8  ;;  %v1097_v32 = vmax.f32 %v1071_v29, %v1087_v30  ;;  %2575 = vmatprep.subr.mxu1 %v1116_v28  ;;  %2634 = vmatpush3.msra.mxu0 %v1614_v56  ;;  %v1609_v1 = vld [vmem:[%s3298_s5 + $0x8] sm:$0xff]  ;;  %v1608_v18 = vld [vmem:[%s3298_s5] sm:$0xff]  ;;  %v3158_v3 = vld [vmem:[%s3298_s5 + $0xb8] sm:$0xff] }
 0x113   : > { %v1123_v31 = vld [vmem:[#allocation3 + $0x30] sm:$0xff]  ;;  %2576 = vmatpush3.msra.mxu1 %v1116_v28  ;;  %2635 = vmatprep.subr.mxu0 %v1613_v57  ;;  %v2262_v24 = vld [vmem:[%s3297_s4] ss:$0 sm:$0xff] }
 0x114   : > { %v1393_v25 = vld [vmem:[#allocation3 + $0x29] sm:$0xff]  ;;  %v1394_v33 = vld [vmem:[#allocation3 + $0x31] sm:$0xff]  ;;  %2561 = vmatmul.mubr.msk.f32.gmra.mxu1 %vm1036_vm1, %v1123_v31  ;;  %1105 = vst.msk [vmem:[#allocation3 + $0x50] sm:$0xff] %vm1036_vm1, %v1097_v32  ;;  %2609 = vmatprep.subr.mxu1 %v2270_v53 }
 0x115   : > { %2600 = vmatprep.mubr.msk.f32.mxu0 %vm1036_vm1, %v1393_v25  ;;  %v1073_v34 = vld [vmem:[#allocation2 + $0x60] ss:$2 sm:$0xff]  ;;  %v1089_v35 = vld [vmem:[#allocation2 + $0x61] ss:$2 sm:$0xff]  ;;  %2636 = vmatpush3.msra.mxu0 %v1613_v57 }
 0x116   : > { %2601 = vmatmul.mubr.msk.f32.gmra.mxu0 %vm1036_vm1, %v1394_v33  ;;  %v1098_v36 = vmax.f32 %v1073_v34, %v1089_v35  ;;  %v1111_v49 = vld [vmem:[#allocation3 + $0x2f] sm:$0xff]  ;;  %2637 = vmatprep.subr.mxu0 %v1612_v59 }
 0x117   : > { %v1124_v37 = vld [vmem:[#allocation3 + $0x48] sm:$0xff]  ;;  %2638 = vmatpush3.msra.mxu0 %v1612_v59 }
 0x118   : > { %2563 = vmatprep.mubr.msk.f32.mxu1 %vm1036_vm1, %v1124_v37  ;;  %1106 = vst.msk [vmem:[#allocation3 + $0x68] sm:$0xff] %vm1036_vm1, %v1098_v36  ;;  %v1112_v12 = vld [vmem:[#allocation3 + $0x47] sm:$0xff]  ;;  %2639 = vmatprep.subr.mxu0 %v1611_v61 }
 0x119   : > { %v1075_v38 = vld [vmem:[#allocation2 + $0x70] ss:$2 sm:$0xff]  ;;  %v1091_v27 = vld [vmem:[#allocation2 + $0x71] ss:$2 sm:$0xff]  ;;  %2640 = vmatpush3.msra.mxu0 %v1611_v61 }
 0x11a   : > { %v1099_v39 = vmax.f32 %v1075_v38, %v1091_v27  ;;  %2641 = vmatprep.subr.mxu0 %v1610_v16 }
 0x11b   : > { %v1125_v40 = vld [vmem:[#allocation3 + $0x50] sm:$0xff]  ;;  %2642 = vmatpush3.msra.mxu0 %v1610_v16 }
 0x11c   : > { %v1395_v41 = vld [vmem:[#allocation3 + $0x49] sm:$0xff]  ;;  %v1396_v42 = vld [vmem:[#allocation3 + $0x51] sm:$0xff]  ;;  %2564 = vmatmul.mubr.msk.f32.gmra.mxu1 %vm1036_vm1, %v1125_v40  ;;  %1107 = vst.msk [vmem:[#allocation3 + $0x70] sm:$0xff] %vm1036_vm1, %v1099_v39  ;;  %2643 = vmatprep.subr.mxu0 %v1609_v1 }
 0x11d   : > { %2603 = vmatprep.mubr.msk.f32.mxu0 %vm1036_vm1, %v1395_v41  ;;  %v1113_v50 = vld [vmem:[#allocation3 + $0x4f] sm:$0xff]  ;;  %2644 = vmatpush3.msra.mxu0 %v1609_v1 }
 0x11e   : > { %2604 = vmatmul.mubr.msk.f32.gmra.mxu0 %vm1036_vm1, %v1396_v42  ;;  %2645 = vmatprep.subr.mxu0 %v1608_v18 }
 0x11f   : > { %v1126_v43 = vld [vmem:[#allocation3 + $0x68] sm:$0xff]  ;;  %2646 = vmatpush3.msra.mxu0 %v1608_v18 }
 0x120   : > { %2566 = vmatprep.mubr.msk.f32.mxu1 %vm1036_vm1, %v1126_v43  ;;  %v1114_v51 = vld [vmem:[#allocation3 + $0x67] sm:$0xff]  ;;  %2675 = vmatprep.subr.mxu0 %v2739_v63 }
 0x123   : > { %v1127_v44 = vld [vmem:[#allocation3 + $0x70] sm:$0xff] }
 0x124   : > { %v1397_v45 = vld [vmem:[#allocation3 + $0x69] sm:$0xff]  ;;  %v1398_v46 = vld [vmem:[#allocation3 + $0x71] sm:$0xff]  ;;  %2567 = vmatmul.mubr.msk.f32.gmra.mxu1 %vm1036_vm1, %v1127_v44 }
 0x125   : > { %2606 = vmatprep.mubr.msk.f32.mxu0 %vm1036_vm1, %v1397_v45  ;;  %2577 = vmatprep.mubr.msk.f32.mxu1 %vm1036_vm1, %v1108_v10  ;;  %v1115_v52 = vld [vmem:[#allocation3 + $0x6f] sm:$0xff] }
 0x126   : > { %2607 = vmatmul.mubr.msk.f32.gmra.mxu0 %vm1036_vm1, %v1398_v46 }
 0x128   : > { %2578 = vmatmul.mubr.msk.f32.vlgmr.msra.gmra.mxu1 %vm1036_vm1, %v1109_v47 }
 0x129   : > { %2580 = vmatprep.mubr.msk.f32.mxu1 %vm1036_vm1, %v1110_v48  ;;  %2610 = vmatpush3.msra.mxu1 %v2270_v53 }
 0x12a   : > { %2611 = vmatprep.subr.mxu1 %v2269_v55 }
 0x12b   : > { %2612 = vmatpush3.msra.mxu1 %v2269_v55 }
 0x12c   : > { %2581 = vmatmul.mubr.msk.f32.gmra.mxu1 %vm1036_vm1, %v1111_v49  ;;  %2613 = vmatprep.subr.mxu1 %v2268_v14 }
 0x12d   : > { %2583 = vmatprep.mubr.msk.f32.mxu1 %vm1036_vm1, %v1112_v12  ;;  %2614 = vmatpush3.msra.mxu1 %v2268_v14 }
 0x12e   : > { %2615 = vmatprep.subr.mxu1 %v2267_v58 }
 0x12f   : > { %2616 = vmatpush3.msra.mxu1 %v2267_v58 }
 0x130   : > { %2584 = vmatmul.mubr.msk.f32.gmra.mxu1 %vm1036_vm1, %v1113_v50  ;;  %2617 = vmatprep.subr.mxu1 %v2266_v60 }
 0x131   : > { %2586 = vmatprep.mubr.msk.f32.mxu1 %vm1036_vm1, %v1114_v51  ;;  %2618 = vmatpush3.msra.mxu1 %v2266_v60 }
 0x132   : > { %2619 = vmatprep.subr.mxu1 %v2265_v62 }
 0x133   : > { %2620 = vmatpush3.msra.mxu1 %v2265_v62 }
 0x134   : > { %2587 = vmatmul.mubr.msk.f32.gmra.mxu1 %vm1036_vm1, %v1115_v52  ;;  %2621 = vmatprep.subr.mxu1 %v2264_v0 }
 0x135   : > { %2622 = vmatpush3.msra.mxu1 %v2264_v0 }
 0x136   : > { %2623 = vmatprep.subr.mxu1 %v2263_v2 }
 0x137   : > { %2624 = vmatpush3.msra.mxu1 %v2263_v2 }
 0x138   : > { %2653 = vmatprep.subr.mxu1 %v3158_v3 }
 0x1cc   : > { %v2559_v4 = vpop.f32.mrf.mxu1 }
 0x1ce   : > { %v1223_v5 = vpop.f32.mrf.mxu1  ;;  %v2599_v11 = vpop.f32.mrf.mxu0 }
 0x1d0   : > { %v1494_v15 = vpop.f32.mrf.mxu0 }
 0x1d4   : > { %v2562_v6 = vpop.f32.mrf.mxu1 }
 0x1d6   : > { %v1233_v7 = vpop.f32.mrf.mxu1  ;;  %v2602_v19 = vpop.f32.mrf.mxu0 }
 0x1d8   : > { %v1504_v8 = vpop.f32.mrf.mxu0 }
 0x1dc   : > { %v2565_v9 = vpop.f32.mrf.mxu1 }
 0x1de   : > { %v1243_v20 = vpop.f32.mrf.mxu1  ;;  %v2605_v25 = vpop.f32.mrf.mxu0 }
 0x1e0   : > { %v1514_v42 = vpop.f32.mrf.mxu0 }
 0x1e4   : > { %v2568_v13 = vpop.f32.mrf.mxu1 }
 0x1e6   : > { %v1253_v17 = vpop.f32.mrf.mxu1  ;;  %v2608_v47 = vpop.f32.mrf.mxu0 }
 0x1e8   : > { %v2579_v21 = vpop.f32.mrf.mxu1  ;;  %v1524_v14 = vpop.f32.mrf.mxu0 }
 0x1e9   : > { %v1358_v22 = vadd.f32 %v2579_v21, %v2559_v4  ;;  %v2285_v21 = vld [vmem:[%s3298_s5 + $0xb0] sm:$0xff] }
 0x1ea   : > { %v1352_v23 = vpop.f32.mrf.mxu1 }
 0x1eb   : > { %v1534_v26 = vadd.f32 %v2599_v11, %v1358_v22  ;;  %v1353_v28 = vadd.f32 %v1352_v23, %v1223_v5  ;;  %v2284_v22 = vld [vmem:[%s3298_s5 + $0xa8] sm:$0xff] }
 0x1ec   : > { %v2582_v29 = vpop.f32.mrf.mxu1 }
 0x1ed   : > { %v1549_v30 = vadd.f32 %v2262_v24, %v1534_v26  ;;  %v1533_v32 = vadd.f32 %v1494_v15, %v1353_v28  ;;  %v1368_v31 = vadd.f32 %v2582_v29, %v2562_v6  ;;  %v2283_v26 = vld [vmem:[%s3298_s5 + $0xa0] sm:$0xff]  ;;  %v2281_v29 = vld [vmem:[%s3298_s5 + $0x90] sm:$0xff] }
 0x1ee   : > { %v1362_v33 = vpop.f32.mrf.mxu1 }
 0x1ef   : > { %v1557_v34 = vmax.f32 %v1549_v30, 0.0  ;;  %v1548_v35 = vadd.f32 %v2262_v24, %v1533_v32  ;;  %v1536_v36 = vadd.f32 %v2602_v19, %v1368_v31  ;;  %v1363_v37 = vadd.f32 %v1362_v33, %v1233_v7  ;;  %v2280_v32 = vld [vmem:[%s3298_s5 + $0x88] sm:$0xff]  ;;  %v2279_v31 = vld [vmem:[%s3298_s5 + $0x80] sm:$0xff] }
 0x1f0   : > { %v2585_v38 = vpop.f32.mrf.mxu1 }
 0x1f1   : > { %1566 = vst.msk [vmem:[#allocation4 + $0x8] sm:$0xff] %vm1564_vm2, %v1557_v34  ;;  %v1556_v27 = vmax.f32 %v1548_v35, 0.0  ;;  %v1551_v39 = vadd.f32 %v2262_v24, %v1536_v36  ;;  %v1535_v40 = vadd.f32 %v1504_v8, %v1363_v37  ;;  %v1378_v41 = vadd.f32 %v2585_v38, %v2565_v9  ;;  %v2019_v35 = vld [vmem:[%s3300_s7 + $0x78] sm:$0xff]  ;;  %v2018_v36 = vld [vmem:[%s3300_s7 + $0x70] sm:$0xff]  ;;  %v2017_v37 = vld [vmem:[%s3300_s7 + $0x68] sm:$0xff] }
 0x1f2   : > { %v1372_v43 = vpop.f32.mrf.mxu1  ;;  %v2016_v38 = vld [vmem:[%s3300_s7 + $0x60] sm:$0xff] }
 0x1f3   : > { %1565 = vst.msk [vmem:[#allocation4] sm:$0xff] %vm1564_vm2, %v1556_v27  ;;  %v1559_v44 = vmax.f32 %v1551_v39, 0.0  ;;  %v1550_v45 = vadd.f32 %v2262_v24, %v1535_v40  ;;  %v1538_v46 = vadd.f32 %v2605_v25, %v1378_v41  ;;  %v1373_v10 = vadd.f32 %v1372_v43, %v1243_v20  ;;  %v2015_v27 = vld [vmem:[%s3300_s7 + $0x58] sm:$0xff]  ;;  %v2014_v39 = vld [vmem:[%s3300_s7 + $0x50] sm:$0xff]  ;;  %v2013_v40 = vld [vmem:[%s3300_s7 + $0x48] sm:$0xff] }
 0x1f4   : > { %v2588_v48 = vpop.f32.mrf.mxu1  ;;  %v2012_v41 = vld [vmem:[%s3300_s7 + $0x40] sm:$0xff]  ;;  %v2010_v43 = vld [vmem:[%s3300_s7 + $0x30] sm:$0xff] }
 0x1f5   : > { %1568 = vst.msk [vmem:[#allocation4 + $0x18] sm:$0xff] %vm1564_vm2, %v1559_v44  ;;  %v1558_v49 = vmax.f32 %v1550_v45, 0.0  ;;  %v1553_v12 = vadd.f32 %v2262_v24, %v1538_v46  ;;  %v1537_v50 = vadd.f32 %v1514_v42, %v1373_v10  ;;  %v1388_v51 = vadd.f32 %v2588_v48, %v2568_v13  ;;  %v2011_v42 = vld [vmem:[%s3300_s7 + $0x38] sm:$0xff]  ;;  %v2009_v44 = vld [vmem:[%s3300_s7 + $0x28] sm:$0xff]  ;;  %v2008_v45 = vld [vmem:[%s3300_s7 + $0x20] sm:$0xff] }
 0x1f6   : > { %v1382_v52 = vpop.f32.mrf.mxu1  ;;  %v2007_v46 = vld [vmem:[%s3300_s7 + $0x18] sm:$0xff]  ;;  %v2006_v10 = vld [vmem:[%s3300_s7 + $0x10] sm:$0xff]  ;;  %v2004_v48 = vld [vmem:[%s3300_s7] sm:$0xff] }
 0x1f7   : > { %1567 = vst.msk [vmem:[#allocation4 + $0x10] sm:$0xff] %vm1564_vm2, %v1558_v49  ;;  %v1561_v53 = vmax.f32 %v1553_v12, 0.0  ;;  %v1552_v54 = vadd.f32 %v2262_v24, %v1537_v50  ;;  %v1540_v55 = vadd.f32 %v2608_v47, %v1388_v51  ;;  %v1383_v56 = vadd.f32 %v1382_v52, %v1253_v17  ;;  %v2005_v47 = vld [vmem:[%s3300_s7 + $0x8] sm:$0xff] }
 0x1f9   : > { %1570 = vst.msk [vmem:[#allocation4 + $0x28] sm:$0xff] %vm1564_vm2, %v1561_v53  ;;  %v1560_v57 = vmax.f32 %v1552_v54, 0.0  ;;  %v1555_v58 = vadd.f32 %v2262_v24, %v1540_v55  ;;  %v1539_v59 = vadd.f32 %v1524_v14, %v1383_v56  ;;  %v2291_v14 = vld [vmem:[%s3299_s6] ss:$0 sm:$0xff] }
 0x1fa   : > { %v1581_v60 = vld [vmem:[#allocation4] ss:$2 sm:$0xff]  ;;  %v1589_v61 = vld [vmem:[#allocation4 + $0x1] ss:$2 sm:$0xff] }
 0x1fb   : > { %1569 = vst.msk [vmem:[#allocation4 + $0x20] sm:$0xff] %vm1564_vm2, %v1560_v57  ;;  %v1563_v62 = vmax.f32 %v1555_v58, 0.0  ;;  %v1554_v16 = vadd.f32 %v2262_v24, %v1539_v59  ;;  %v1596_v0 = vmax.f32 %v1581_v60, %v1589_v61 }
 0x1fd   : > { %1572 = vst.msk [vmem:[#allocation4 + $0x38] sm:$0xff] %vm1564_vm2, %v1563_v62  ;;  %v1562_v1 = vmax.f32 %v1554_v16, 0.0  ;;  %1600 = vst.msk [vmem:[#allocation5 + $0x8] sm:$0xff] %vm1564_vm2, %v1596_v0 }
 0x1fe   : > { %v1583_v2 = vld [vmem:[#allocation4 + $0x10] ss:$2 sm:$0xff]  ;;  %v1591_v18 = vld [vmem:[#allocation4 + $0x11] ss:$2 sm:$0xff] }
 0x1ff   : > { %v1597_v4 = vmax.f32 %v1583_v2, %v1591_v18  ;;  %1571 = vst.msk [vmem:[#allocation4 + $0x30] sm:$0xff] %vm1564_vm2, %v1562_v1 }
 0x201   : > { %1601 = vst.msk [vmem:[#allocation5 + $0x20] sm:$0xff] %vm1564_vm2, %v1597_v4 }
 0x202   : > { %v1585_v5 = vld [vmem:[#allocation4 + $0x20] ss:$2 sm:$0xff]  ;;  %v1593_v6 = vld [vmem:[#allocation4 + $0x21] ss:$2 sm:$0xff] }
 0x203   : > { %v1598_v7 = vmax.f32 %v1585_v5, %v1593_v6 }
 0x204   : > { %v1616_v9 = vld [vmem:[#allocation5 + $0x8] sm:$0xff] }
 0x205   : > { %v1604_v11 = vld [vmem:[#allocation5 + $0x7] sm:$0xff]  ;;  %2625 = vmatprep.mubr.msk.f32.mxu1 %vm1564_vm2, %v1616_v9  ;;  %1602 = vst.msk [vmem:[#allocation5 + $0x38] sm:$0xff] %vm1564_vm2, %v1598_v7 }
 0x206   : > { %2647 = vmatprep.mubr.msk.f32.mxu0 %vm1564_vm2, %v1604_v11  ;;  %v1587_v20 = vld [vmem:[#allocation4 + $0x30] ss:$2 sm:$0xff]  ;;  %v1595_v13 = vld [vmem:[#allocation4 + $0x31] ss:$2 sm:$0xff] }
 0x207   : > { %v1599_v15 = vmax.f32 %v1587_v20, %v1595_v13  ;;  %v1823_v30 = vld [vmem:[#allocation5 + $0x9] sm:$0xff] }
 0x208   : > { %v1617_v17 = vld [vmem:[#allocation5 + $0x20] sm:$0xff] }
 0x209   : > { %v1605_v19 = vld [vmem:[#allocation5 + $0x1f] sm:$0xff]  ;;  %2626 = vmatmul.mubr.msk.f32.vlgmr.msra.gmra.mxu1 %vm1564_vm2, %v1617_v17  ;;  %1603 = vst.msk [vmem:[#allocation5 + $0x50] sm:$0xff] %vm1564_vm2, %v1599_v15 }
 0x20a   : > { %2648 = vmatmul.mubr.msk.f32.vlgmr.msra.gmra.mxu0 %vm1564_vm2, %v1605_v19  ;;  %2654 = vmatpush3.msra.mxu1 %v3158_v3  ;;  %v2282_v3 = vld [vmem:[%s3298_s5 + $0x98] sm:$0xff]  ;;  %v1824_v25 = vld [vmem:[#allocation5 + $0x21] sm:$0xff] }
 0x20b   : > { %2655 = vmatprep.subr.mxu1 %v2285_v21  ;;  %2676 = vmatpush3.msra.mxu0 %v2019_v35 }
 0x20c   : > { %2656 = vmatpush3.msra.mxu1 %v2285_v21  ;;  %v1618_v24 = vld [vmem:[#allocation5 + $0x38] sm:$0xff]  ;;  %2677 = vmatprep.subr.mxu0 %v2739_v63 }
 0x20d   : > { %v1606_v23 = vld [vmem:[#allocation5 + $0x37] sm:$0xff]  ;;  %2657 = vmatprep.subr.mxu1 %v2284_v22  ;;  %2628 = vmatprep.mubr.msk.f32.mxu1 %vm1564_vm2, %v1618_v24 }
 0x20e   : > { %2650 = vmatprep.mubr.msk.f32.mxu0 %vm1564_vm2, %v1606_v23  ;;  %2658 = vmatpush3.msra.mxu1 %v2284_v22  ;;  %v1825_v33 = vld [vmem:[#allocation5 + $0x39] sm:$0xff] }
 0x20f   : > { %2659 = vmatprep.subr.mxu1 %v2283_v26  ;;  %2678 = vmatpush3.msra.mxu0 %v2018_v36 }
 0x210   : > { %2660 = vmatpush3.msra.mxu1 %v2283_v26  ;;  %v1619_v28 = vld [vmem:[#allocation5 + $0x50] sm:$0xff]  ;;  %2679 = vmatprep.subr.mxu0 %v2739_v63 }
 0x211   : > { %v1607_v8 = vld [vmem:[#allocation5 + $0x4f] sm:$0xff]  ;;  %2661 = vmatprep.subr.mxu1 %v2282_v3  ;;  %2629 = vmatmul.mubr.msk.f32.gmra.mxu1 %vm1564_vm2, %v1619_v28 }
 0x212   : > { %2651 = vmatmul.mubr.msk.f32.gmra.mxu0 %vm1564_vm2, %v1607_v8  ;;  %2662 = vmatpush3.msra.mxu1 %v2282_v3  ;;  %v1826_v34 = vld [vmem:[#allocation5 + $0x51] sm:$0xff] }
 0x213   : > { %2663 = vmatprep.subr.mxu1 %v2281_v29  ;;  %2669 = vmatprep.mubr.msk.f32.mxu1 %vm1564_vm2, %v1823_v30 }
 0x214   : > { %2664 = vmatpush3.msra.mxu1 %v2281_v29  ;;  %2680 = vmatpush3.msra.mxu0 %v2017_v37 }
 0x215   : > { %2665 = vmatprep.subr.mxu1 %v2280_v32  ;;  %2681 = vmatprep.subr.mxu0 %v2739_v63 }
 0x216   : > { %2666 = vmatpush3.msra.mxu1 %v2280_v32  ;;  %2682 = vmatpush3.msra.mxu0 %v2016_v38 }
 0x217   : > { %2667 = vmatprep.subr.mxu1 %v2279_v31  ;;  %2683 = vmatprep.subr.mxu0 %v2739_v63 }
 0x218   : > { %2668 = vmatpush3.msra.mxu1 %v2279_v31  ;;  %2707 = vmatprep.mubr.msk.f32.mxu0 %vm2740_vm3, %v2739_v63 }
 0x219   : > { %2670 = vmatmul.mubr.msk.f32.vlgmr.msra.gmra.mxu1 %vm1564_vm2, %v1824_v25  ;;  %2684 = vmatpush3.msra.mxu0 %v2015_v27 }
 0x21a   : > { %2672 = vmatprep.mubr.msk.f32.mxu1 %vm1564_vm2, %v1825_v33  ;;  %2685 = vmatprep.subr.mxu0 %v2739_v63 }
 0x21b   : > { %2686 = vmatpush3.msra.mxu0 %v2014_v39 }
 0x21c   : > { %2687 = vmatprep.subr.mxu0 %v2739_v63 }
 0x21d   : > { %2673 = vmatmul.mubr.msk.f32.gmra.mxu1 %vm1564_vm2, %v1826_v34  ;;  %2688 = vmatpush3.msra.mxu0 %v2013_v40 }
 0x21e   : > { %2689 = vmatprep.subr.mxu0 %v2739_v63 }
 0x21f   : > { %2690 = vmatpush3.msra.mxu0 %v2012_v41 }
 0x220   : > { %2691 = vmatprep.subr.mxu0 %v2739_v63 }
 0x221   : > { %2692 = vmatpush3.msra.mxu0 %v2011_v42 }
 0x222   : > { %2693 = vmatprep.subr.mxu0 %v2739_v63 }
 0x223   : > { %2694 = vmatpush3.msra.mxu0 %v2010_v43 }
 0x224   : > { %2695 = vmatprep.subr.mxu0 %v2739_v63 }
 0x225   : > { %2696 = vmatpush3.msra.mxu0 %v2009_v44 }
 0x226   : > { %2697 = vmatprep.subr.mxu0 %v2739_v63 }
 0x227   : > { %2698 = vmatpush3.msra.mxu0 %v2008_v45 }
 0x228   : > { %2699 = vmatprep.subr.mxu0 %v2739_v63 }
 0x229   : > { %2700 = vmatpush3.msra.mxu0 %v2007_v46 }
 0x22a   : > { %2701 = vmatprep.subr.mxu0 %v2739_v63 }
 0x22b   : > { %2702 = vmatpush3.msra.mxu0 %v2006_v10 }
 0x22c   : > { %2703 = vmatprep.subr.mxu0 %v2739_v63 }
 0x22d   : > { %2704 = vmatpush3.msra.mxu0 %v2005_v47 }
 0x22e   : > { %2705 = vmatprep.subr.mxu0 %v2739_v63 }
 0x22f   : > { %2706 = vmatpush3.msra.mxu0 %v2004_v48 }
 0x2c9   : > { %v2627_v49 = vpop.f32.mrf.mxu1 }
 0x2ca   : > { %v2649_v12 = vpop.f32.mrf.mxu0 }
 0x2cb   : > { %v1707_v50 = vpop.f32.mrf.mxu1  ;;  %v1810_v55 = vadd.f32 %v2649_v12, %v2627_v49 }
 0x2cc   : > { %v1804_v52 = vpop.f32.mrf.mxu0 }
 0x2cd   : > { %v1805_v57 = vadd.f32 %v1804_v52, %v1707_v50 }
 0x2d1   : > { %v2630_v51 = vpop.f32.mrf.mxu1 }
 0x2d2   : > { %v2652_v53 = vpop.f32.mrf.mxu0 }
 0x2d3   : > { %v1717_v54 = vpop.f32.mrf.mxu1  ;;  %v1820_v61 = vadd.f32 %v2652_v53, %v2630_v51 }
 0x2d4   : > { %v1814_v59 = vpop.f32.mrf.mxu0 }
 0x2d5   : > { %v1815_v0 = vadd.f32 %v1814_v59, %v1717_v54 }
 0x2d9   : > { %v2671_v56 = vpop.f32.mrf.mxu1 }
 0x2da   : > { %v1934_v58 = vadd.f32 %v2671_v56, %v1810_v55  ;;  %v2292_v56 = vld [vmem:[%s3301_s8] ss:$0 sm:$0xff] }
 0x2db   : > { %v1914_v60 = vpop.f32.mrf.mxu1 }
 0x2dc   : > { %v1945_v63 = vadd.f32 %v2291_v14, %v1934_v58  ;;  %v1933_v62 = vadd.f32 %v1914_v60, %v1805_v57 }
 0x2dd   : > { %v2674_v16 = vpop.f32.mrf.mxu1 }
 0x2de   : > { %v1949_v1 = vmax.f32 %v1945_v63, 0.0  ;;  %v1944_v2 = vadd.f32 %v2291_v14, %v1933_v62  ;;  %v1936_v18 = vadd.f32 %v2674_v16, %v1820_v61 }
 0x2df   : > { %v1924_v4 = vpop.f32.mrf.mxu1 }
 0x2e0   : > { %1953 = vst [vmem:[#allocation6 + $0x8] sm:$0xff] %v1949_v1  ;;  %v1948_v5 = vmax.f32 %v1944_v2, 0.0  ;;  %v1947_v6 = vadd.f32 %v2291_v14, %v1936_v18  ;;  %v1935_v7 = vadd.f32 %v1924_v4, %v1815_v0 }
 0x2e2   : > { %1952 = vst [vmem:[#allocation6] sm:$0xff] %v1948_v5  ;;  %v1951_v9 = vmax.f32 %v1947_v6, 0.0  ;;  %v1946_v11 = vadd.f32 %v2291_v14, %v1935_v7 }
 0x2e4   : > { %1955 = vst [vmem:[#allocation6 + $0x18] sm:$0xff] %v1951_v9  ;;  %v1950_v20 = vmax.f32 %v1946_v11, 0.0 }
 0x2e6   : > { %1954 = vst [vmem:[#allocation6 + $0x10] sm:$0xff] %v1950_v20 }
 0x2e7   : > { %v1958_v13 = vld [vmem:[#allocation6 + $0x8] ss:$2 sm:$0xf]  ;;  %v1966_v15 = vld [vmem:[#allocation6 + $0x9] ss:$2 sm:$0xf] }
 0x2e8   : > { %v1972_v17 = vmax.f32 %v1958_v13, %v1966_v15 }
 0x2e9   : > { %v1956_v19 = vld [vmem:[#allocation6] ss:$2 sm:$0xf]  ;;  %v1964_v21 = vld [vmem:[#allocation6 + $0x1] ss:$2 sm:$0xf] }
 0x2ea   : > { %v1971_v22 = vmax.f32 %v1956_v19, %v1964_v21  ;;  %v1983_v24 = vsel %vm1975_vm4, %v1972_v17, 0.0 }
 0x2eb   : > { %v1962_v23 = vld [vmem:[#allocation6 + $0x18] ss:$2 sm:$0xf]  ;;  %v1970_v26 = vld [vmem:[#allocation6 + $0x19] ss:$2 sm:$0xf] }
 0x2ec   : > { %v1974_v3 = vmax.f32 %v1962_v23, %v1970_v26  ;;  %v1976_v28 = vsel %vm1975_vm4, %v1971_v22, 0.0  ;;  %v1984_v8 = vrot.slane %v1983_v24, 4 }
 0x2ed   : > { %v1960_v29 = vld [vmem:[#allocation6 + $0x10] ss:$2 sm:$0xf]  ;;  %v1968_v30 = vld [vmem:[#allocation6 + $0x11] ss:$2 sm:$0xf] }
 0x2ee   : > { %v1973_v32 = vmax.f32 %v1960_v29, %v1968_v30  ;;  %v1977_v31 = vrot.slane %v1976_v28, 4  ;;  %v1985_v25 = vadd.f32 %v1984_v8, %v1983_v24  ;;  %v1997_v33 = vsel %vm1975_vm4, %v1974_v3, 0.0 }
 0x2ef   : > { %v1998_v34 = vrot.slane %v1997_v33, 4 }
 0x2f0   : > { %v1978_v35 = vadd.f32 %v1977_v31, %v1976_v28  ;;  %v1986_v36 = vrot.slane %v1985_v25, 2  ;;  %v1990_v37 = vsel %vm1975_vm4, %v1973_v32, 0.0 }
 0x2f1   : > { %v1991_v38 = vrot.slane %v1990_v37, 4  ;;  %v1999_v27 = vadd.f32 %v1998_v34, %v1997_v33 }
 0x2f2   : > { %v1979_v39 = vrot.slane %v1978_v35, 2  ;;  %v1987_v40 = vadd.f32 %v1986_v36, %v1985_v25 }
 0x2f3   : > { %v1992_v41 = vadd.f32 %v1991_v38, %v1990_v37  ;;  %v2000_v42 = vrot.slane %v1999_v27, 2 }
 0x2f4   : > { %v1980_v43 = vadd.f32 %v1979_v39, %v1978_v35  ;;  %v1988_v10 = vrot.slane %v1987_v40, 1 }
 0x2f5   : > { %v1993_v44 = vrot.slane %v1992_v41, 2  ;;  %v2001_v45 = vadd.f32 %v2000_v42, %v1999_v27 }
 0x2f6   : > { %v1981_v46 = vrot.slane %v1980_v43, 1  ;;  %v1989_v50 = vadd.f32 %v1988_v10, %v1987_v40 }
 0x2f7   : > { %v1994_v47 = vadd.f32 %v1993_v44, %v1992_v41  ;;  %v2002_v49 = vrot.slane %v2001_v45, 1 }
 0x2f8   : > { %v1982_v48 = vadd.f32 %v1981_v46, %v1980_v43 }
 0x2f9   : > { %v1995_v12 = vrot.slane %v1994_v47, 1  ;;  %v2003_v52 = vadd.f32 %v2002_v49, %v2001_v45 }
 0x2fa   : > { %v2032_v53 = vsel %vm2031_vm5, %v1989_v50, %v1982_v48 }
 0x2fb   : > { %v1996_v51 = vadd.f32 %v1995_v12, %v1994_v47 }
 0x2fd   : > { %v2034_v54 = vsel %vm2033_vm6, %v1996_v51, %v2032_v53 }
 0x2fe   : > { %v2036_v55 = vsel %vm2035_vm7, %v2003_v52, %v2034_v54 }
 0x2ff   : > { %2708 = vmatmul.mubr.f32.vlgmr.msra.gmra.mxu0 %v2036_v55 }
 0x3bf   : > { %v2104_v14 = vpop.f32.mrf.mxu0 }
 0x3c0   : > { %v2105_v57 = vadd.f32 %v2292_v56, %v2104_v14 }
 0x3c1   : > { %v2709_v58 = vpop.f32.mrf.mxu0 }
 0x3c2   : > { %2109 = vst.msk [vmem:[%s335_s28] sm:$0xf] %vm2108_vm8, %v2105_v57 }
 0x3c3 PF: > { %s19_s30 = sadd.s32 1, %s2737_s30  }
 0x3c4   : > { %p16_p5 = scmp.ge.s32.totalorder %s19_s30, 4  }
 0x3c6   :  { %18 = sbr.rel (!%p16_p5) target bundleno = 1 (0x1), region = 121 }

</bundles_post_ra>
